<compile_context>
chip_gen: v5e
topology: v5e:2x2
jax: 0.10.0
libtpu: 0.0.40
codegen_flags: <defaults>
</compile_context>

<pallas_src>
import functools

import jax
import jax.numpy as jnp
from jax import lax
from jax.experimental import pallas as pl
from jax.experimental.pallas import tpu as pltpu


# ---------------------------------------------------------------------------
# Fused 4-layer encoder kernel (one image per grid step)
# ---------------------------------------------------------------------------
def _encoder_kernel(p_ref, w1_ref, b1_ref, w2_ref, b2_ref, w3_ref, b3_ref,
                    w4_ref, b4_ref, o_ref, act_ref, *, width, lens):
    """width: layer-1 output width W1 (storage width of the flattened grid).
    lens : (L2, L3, L4) number of flattened positions computed per layer."""
    # ---- layer 1: patches (normalization already folded into w1/b1) --------
    a = jnp.dot(p_ref[0], w1_ref[...], preferred_element_type=jnp.float32)
    a = jnp.maximum(a + b1_ref[...], 0.0)                     # (P1, 32) f32

    # ---- layers 2..4: 9-tap accumulation on the flattened spatial grid -----
    # Output position p (= h*width + w) needs inputs at p + kh*width + kw, so
    # each tap is a contiguous offset window of the staged activation.
    for w_ref, b_ref, l_out in ((w2_ref, b2_ref, lens[0]),
                                (w3_ref, b3_ref, lens[1]),
                                (w4_ref, b4_ref, lens[2])):
        l_in = a.shape[0]
        act_ref[0:l_in, :] = a.astype(act_ref.dtype)          # stage in VMEM
        cout = w_ref.shape[-1]
        acc = jnp.zeros((l_out, cout), jnp.float32)
        for kh in range(3):
            for kw in range(3):
                off = kh * width + kw
                lhs = act_ref[off:off + l_out, :]
                acc = acc + jnp.dot(lhs, w_ref[kh * 3 + kw],
                                    preferred_element_type=jnp.float32)
        a = jnp.maximum(acc + b_ref[...], 0.0)                # (l_out, 32) f32

    o_ref[0] = a.astype(o_ref.dtype)


# ---------------------------------------------------------------------------
# Wrapper
# ---------------------------------------------------------------------------
def encoder_forward(obs_nchw, params, *, matmul_dtype=jnp.float32):
    """obs_nchw: (N, C, H, W) float32 in [0, 255]. Returns (N, 32*H4*W4)."""
    N, C, H, W = obs_nchw.shape
    KH = KW = 3
    S1 = 2
    H1 = (H - KH) // S1 + 1
    W1 = (W - KW) // S1 + 1
    assert H1 >= 7 and W1 >= 7, "input too small for four valid 3x3 convs"
    P1 = H1 * W1
    K1 = KH * KW * C

    (w1, b1), (w2, b2), (w3, b3), (w4, b4) = params
    CM = w2.shape[0]                                          # 32

    # ---- fold x/255 - 0.5 into conv1 (no separate normalization pass) ------
    w1n = w1 * (1.0 / 255.0)
    b1n = b1 - 0.5 * jnp.sum(w1, axis=(1, 2, 3))

    # ---- layer-1 im2col on the raw obs (stride 2, tiny Cin: ~input-sized) --
    x = jnp.transpose(obs_nchw, (0, 2, 3, 1))                 # NHWC
    cols = []
    for kh in range(KH):
        for kw in range(KW):
            cols.append(x[:, kh:kh + S1 * (H1 - 1) + 1:S1,
                          kw:kw + S1 * (W1 - 1) + 1:S1, :])
    patches = jnp.concatenate(cols, axis=-1).reshape(N, P1, K1)
    patches = patches.astype(matmul_dtype)

    # ---- weights in matmul form ---------------------------------------------
    w1_mat = jnp.transpose(w1n, (2, 3, 1, 0)).reshape(K1, CM).astype(matmul_dtype)

    def tap_mats(w):                                          # OIHW -> (9, Cin, Cout)
        return (jnp.transpose(w, (2, 3, 1, 0))
                .reshape(9, w.shape[1], w.shape[0]).astype(matmul_dtype))

    w2_t, w3_t, w4_t = tap_mats(w2), tap_mats(w3), tap_mats(w4)
    b1_m = b1n.reshape(1, CM).astype(jnp.float32)
    b2_m = b2.reshape(1, CM).astype(jnp.float32)
    b3_m = b3.reshape(1, CM).astype(jnp.float32)
    b4_m = b4.reshape(1, CM).astype(jnp.float32)

    # flattened-grid lengths computed per layer (storage width stays W1)
    L2 = P1 - 2 * W1 - 2
    L3 = L2 - 2 * W1 - 2
    L4 = L3 - 2 * W1 - 2

    kernel = functools.partial(_encoder_kernel, width=W1, lens=(L2, L3, L4))
    const2 = lambda n: (0, 0)
    const3 = lambda n: (0, 0, 0)

    out = pl.pallas_call(
        kernel,
        out_shape=jax.ShapeDtypeStruct((N, L4, CM), jnp.float32),
        grid=(N,),
        in_specs=[
            pl.BlockSpec((1, P1, K1), lambda n: (n, 0, 0)),   # streamed per image
            pl.BlockSpec((K1, CM), const2),                   # weights: VMEM-resident
            pl.BlockSpec((1, CM), const2),
            pl.BlockSpec((9, CM, CM), const3),
            pl.BlockSpec((1, CM), const2),
            pl.BlockSpec((9, CM, CM), const3),
            pl.BlockSpec((1, CM), const2),
            pl.BlockSpec((9, CM, CM), const3),
            pl.BlockSpec((1, CM), const2),
        ],
        out_specs=pl.BlockSpec((1, L4, CM), lambda n: (n, 0, 0)),
        scratch_shapes=[pltpu.VMEM((P1, CM), matmul_dtype)],
        compiler_params=pltpu.CompilerParams(
            dimension_semantics=("parallel",),
            vmem_limit_bytes=32 * 1024 * 1024),
    )(patches, w1_mat, b1_m, w2_t, b2_m, w3_t, b3_m, w4_t, b4_m)

    # ---- valid-region extraction + PyTorch NCHW flatten ---------------------
    H4, W4 = H1 - 6, W1 - 6
    out = jnp.pad(out, ((0, 0), (0, H4 * W1 - L4), (0, 0)))
    out = out.reshape(N, H4, W1, CM)[:, :, :W4, :]            # valid NHWC
    return jnp.transpose(out, (0, 3, 1, 2)).reshape(N, -1)    # NCHW flatten


# ---------------------------------------------------------------------------
# Params init + pure-JAX reference
# ---------------------------------------------------------------------------
def init_encoder_params(key, in_channels):
    """Deterministic synthetic init matching the PyTorch module's shapes."""
    ks = jax.random.split(key, 8)
    params = []
    cin = in_channels
    for i in range(4):
        cout = 32
        w = 0.1 * jax.random.normal(ks[2 * i], (cout, cin, 3, 3), jnp.float32)
        b = 0.01 * jax.random.normal(ks[2 * i + 1], (cout,), jnp.float32)
        params.append((w, b))
        cin = cout
    return params


def encoder_reference(obs_nchw, params):
    """Pure-JAX reference (lax conv) for correctness checking."""
    x = obs_nchw / 255.0 - 0.5
    strides = (2, 1, 1, 1)
    for (w, b), s in zip(params, strides):
        x = lax.conv_general_dilated(
            x, w, window_strides=(s, s), padding="VALID",
            dimension_numbers=("NCHW", "OIHW", "NCHW"))
        x = jnp.maximum(x + b.reshape(1, -1, 1, 1), 0.0)
    return x.reshape(x.shape[0], -1)


if __name__ == "__main__":
    key = jax.random.PRNGKey(0)
    k_obs, k_par = jax.random.split(key)

    # small shapes: batch=2, channels=4, spatial=16 -> conv chain 16->7->5->3->1
    N, C, H, W = 2, 4, 16, 16
    obs = jax.random.uniform(k_obs, (N, C, H, W), jnp.float32, 0.0, 255.0)
    params = init_encoder_params(k_par, C)

    fwd = jax.jit(encoder_forward)
    out = jax.block_until_ready(fwd(obs, params))

    ref = encoder_reference(obs, params)
    assert out.shape == ref.shape, (out.shape, ref.shape)
    err = jnp.max(jnp.abs(out - ref))
    assert jnp.allclose(out, ref, rtol=1e-4, atol=1e-4), f"max abs err = {err}"

    print("KERNEL_OK")
</pallas_src>

<mosaic_0001>
module attributes {stable_mosaic.version = 11 : i64} {
  func.func @_encoder_kernel(%arg0: i32, %arg1: memref<1x49x36xf32, #tpu.memory_space<vmem>>, %arg2: memref<36x32xf32, #tpu.memory_space<vmem>>, %arg3: memref<1x32xf32, #tpu.memory_space<vmem>>, %arg4: memref<9x32x32xf32, #tpu.memory_space<vmem>>, %arg5: memref<1x32xf32, #tpu.memory_space<vmem>>, %arg6: memref<9x32x32xf32, #tpu.memory_space<vmem>>, %arg7: memref<1x32xf32, #tpu.memory_space<vmem>>, %arg8: memref<9x32x32xf32, #tpu.memory_space<vmem>>, %arg9: memref<1x32xf32, #tpu.memory_space<vmem>>, %arg10: memref<1x1x32xf32, #tpu.memory_space<vmem>>, %arg11: memref<49x32xf32, #tpu.memory_space<vmem>>) attributes {dimension_semantics = [#tpu.dimension_semantics<parallel>], iteration_bounds = array<i64: 2>, scalar_prefetch = 0 : i64, scratch_operands = 1 : i64, tpu.core_type = #tpu.core_type<tc>, window_params = [{transform_indices = @transform_0, window_bounds = array<i64: 1, 49, 36>}, {pipeline_mode = #tpu.pipeline_mode<synchronous>, transform_indices = @transform_1, window_bounds = array<i64: 36, 32>}, {pipeline_mode = #tpu.pipeline_mode<synchronous>, transform_indices = @transform_2, window_bounds = array<i64: 1, 32>}, {pipeline_mode = #tpu.pipeline_mode<synchronous>, transform_indices = @transform_3, window_bounds = array<i64: 9, 32, 32>}, {pipeline_mode = #tpu.pipeline_mode<synchronous>, transform_indices = @transform_4, window_bounds = array<i64: 1, 32>}, {pipeline_mode = #tpu.pipeline_mode<synchronous>, transform_indices = @transform_5, window_bounds = array<i64: 9, 32, 32>}, {pipeline_mode = #tpu.pipeline_mode<synchronous>, transform_indices = @transform_6, window_bounds = array<i64: 1, 32>}, {pipeline_mode = #tpu.pipeline_mode<synchronous>, transform_indices = @transform_7, window_bounds = array<i64: 9, 32, 32>}, {pipeline_mode = #tpu.pipeline_mode<synchronous>, transform_indices = @transform_8, window_bounds = array<i64: 1, 32>}, {transform_indices = @transform_9, window_bounds = array<i64: 1, 1, 32>}]} {
    %c0 = arith.constant 0 : index
    %c0_0 = arith.constant 0 : index
    %c0_1 = arith.constant 0 : index
    %0 = vector.load %arg1[%c0, %c0_0, %c0_1] : memref<1x49x36xf32, #tpu.memory_space<vmem>>, vector<1x49x36xf32>
    %1 = vector.shape_cast %0 : vector<1x49x36xf32> to vector<49x36xf32>
    %c0_2 = arith.constant 0 : index
    %c0_3 = arith.constant 0 : index
    %2 = vector.load %arg2[%c0_2, %c0_3] : memref<36x32xf32, #tpu.memory_space<vmem>>, vector<36x32xf32>
    %cst = arith.constant dense<0.000000e+00> : vector<49x32xf32>
    %3 = tpu.matmul %1, %2, %cst {dimension_numbers = #tpu.dot_dimension_numbers<[1], [0], [0], [1], [0, 0, 1, 1], [], []>} : vector<49x36xf32>, vector<36x32xf32>, vector<49x32xf32> -> vector<49x32xf32>
    %c0_4 = arith.constant 0 : index
    %c0_5 = arith.constant 0 : index
    %4 = vector.load %arg3[%c0_4, %c0_5] : memref<1x32xf32, #tpu.memory_space<vmem>>, vector<1x32xf32>
    %5 = vector.broadcast %4 : vector<1x32xf32> to vector<49x32xf32>
    %6 = arith.addf %3, %5 : vector<49x32xf32>
    %cst_6 = arith.constant 0.000000e+00 : f32
    %7 = vector.broadcast %cst_6 : f32 to vector<49x32xf32>
    %8 = arith.maximumf %6, %7 : vector<49x32xf32>
    %c0_7 = arith.constant 0 : index
    %c0_8 = arith.constant 0 : index
    %9 = vector.load %arg11[%c0_7, %c0_8] : memref<49x32xf32, #tpu.memory_space<vmem>>, vector<49x32xf32>
    tpu.vector_store %arg11[%c0_7, %c0_8], %8 {strides = array<i32>} : memref<49x32xf32, #tpu.memory_space<vmem>>, vector<49x32xf32>,
    %cst_9 = arith.constant 0.000000e+00 : f32
    %10 = vector.broadcast %cst_9 : f32 to vector<33x32xf32>
    %c0_10 = arith.constant 0 : index
    %c0_11 = arith.constant 0 : index
    %11 = vector.load %arg11[%c0_10, %c0_11] : memref<49x32xf32, #tpu.memory_space<vmem>>, vector<33x32xf32>
    %c0_12 = arith.constant 0 : index
    %c0_13 = arith.constant 0 : index
    %c0_14 = arith.constant 0 : index
    %12 = vector.load %arg4[%c0_12, %c0_13, %c0_14] : memref<9x32x32xf32, #tpu.memory_space<vmem>>, vector<1x32x32xf32>
    %13 = vector.shape_cast %12 : vector<1x32x32xf32> to vector<32x32xf32>
    %cst_15 = arith.constant dense<0.000000e+00> : vector<33x32xf32>
    %14 = tpu.matmul %11, %13, %cst_15 {dimension_numbers = #tpu.dot_dimension_numbers<[1], [0], [0], [1], [0, 0, 1, 1], [], []>} : vector<33x32xf32>, vector<32x32xf32>, vector<33x32xf32> -> vector<33x32xf32>
    %15 = arith.addf %10, %14 : vector<33x32xf32>
    %c1 = arith.constant 1 : index
    %c0_16 = arith.constant 0 : index
    %16 = vector.load %arg11[%c1, %c0_16] : memref<49x32xf32, #tpu.memory_space<vmem>>, vector<33x32xf32>
    %c1_17 = arith.constant 1 : index
    %c0_18 = arith.constant 0 : index
    %c0_19 = arith.constant 0 : index
    %17 = vector.load %arg4[%c1_17, %c0_18, %c0_19] : memref<9x32x32xf32, #tpu.memory_space<vmem>>, vector<1x32x32xf32>
    %18 = vector.shape_cast %17 : vector<1x32x32xf32> to vector<32x32xf32>
    %cst_20 = arith.constant dense<0.000000e+00> : vector<33x32xf32>
    %19 = tpu.matmul %16, %18, %cst_20 {dimension_numbers = #tpu.dot_dimension_numbers<[1], [0], [0], [1], [0, 0, 1, 1], [], []>} : vector<33x32xf32>, vector<32x32xf32>, vector<33x32xf32> -> vector<33x32xf32>
    %20 = arith.addf %15, %19 : vector<33x32xf32>
    %c2 = arith.constant 2 : index
    %c0_21 = arith.constant 0 : index
    %21 = vector.load %arg11[%c2, %c0_21] : memref<49x32xf32, #tpu.memory_space<vmem>>, vector<33x32xf32>
    %c2_22 = arith.constant 2 : index
    %c0_23 = arith.constant 0 : index
    %c0_24 = arith.constant 0 : index
    %22 = vector.load %arg4[%c2_22, %c0_23, %c0_24] : memref<9x32x32xf32, #tpu.memory_space<vmem>>, vector<1x32x32xf32>
    %23 = vector.shape_cast %22 : vector<1x32x32xf32> to vector<32x32xf32>
    %cst_25 = arith.constant dense<0.000000e+00> : vector<33x32xf32>
    %24 = tpu.matmul %21, %23, %cst_25 {dimension_numbers = #tpu.dot_dimension_numbers<[1], [0], [0], [1], [0, 0, 1, 1], [], []>} : vector<33x32xf32>, vector<32x32xf32>, vector<33x32xf32> -> vector<33x32xf32>
    %25 = arith.addf %20, %24 : vector<33x32xf32>
    %c7 = arith.constant 7 : index
    %c0_26 = arith.constant 0 : index
    %26 = vector.load %arg11[%c7, %c0_26] : memref<49x32xf32, #tpu.memory_space<vmem>>, vector<33x32xf32>
    %c3 = arith.constant 3 : index
    %c0_27 = arith.constant 0 : index
    %c0_28 = arith.constant 0 : index
    %27 = vector.load %arg4[%c3, %c0_27, %c0_28] : memref<9x32x32xf32, #tpu.memory_space<vmem>>, vector<1x32x32xf32>
    %28 = vector.shape_cast %27 : vector<1x32x32xf32> to vector<32x32xf32>
    %cst_29 = arith.constant dense<0.000000e+00> : vector<33x32xf32>
    %29 = tpu.matmul %26, %28, %cst_29 {dimension_numbers = #tpu.dot_dimension_numbers<[1], [0], [0], [1], [0, 0, 1, 1], [], []>} : vector<33x32xf32>, vector<32x32xf32>, vector<33x32xf32> -> vector<33x32xf32>
    %30 = arith.addf %25, %29 : vector<33x32xf32>
    %c8 = arith.constant 8 : index
    %c0_30 = arith.constant 0 : index
    %31 = vector.load %arg11[%c8, %c0_30] : memref<49x32xf32, #tpu.memory_space<vmem>>, vector<33x32xf32>
    %c4 = arith.constant 4 : index
    %c0_31 = arith.constant 0 : index
    %c0_32 = arith.constant 0 : index
    %32 = vector.load %arg4[%c4, %c0_31, %c0_32] : memref<9x32x32xf32, #tpu.memory_space<vmem>>, vector<1x32x32xf32>
    %33 = vector.shape_cast %32 : vector<1x32x32xf32> to vector<32x32xf32>
    %cst_33 = arith.constant dense<0.000000e+00> : vector<33x32xf32>
    %34 = tpu.matmul %31, %33, %cst_33 {dimension_numbers = #tpu.dot_dimension_numbers<[1], [0], [0], [1], [0, 0, 1, 1], [], []>} : vector<33x32xf32>, vector<32x32xf32>, vector<33x32xf32> -> vector<33x32xf32>
    %35 = arith.addf %30, %34 : vector<33x32xf32>
    %c9 = arith.constant 9 : index
    %c0_34 = arith.constant 0 : index
    %36 = vector.load %arg11[%c9, %c0_34] : memref<49x32xf32, #tpu.memory_space<vmem>>, vector<33x32xf32>
    %c5 = arith.constant 5 : index
    %c0_35 = arith.constant 0 : index
    %c0_36 = arith.constant 0 : index
    %37 = vector.load %arg4[%c5, %c0_35, %c0_36] : memref<9x32x32xf32, #tpu.memory_space<vmem>>, vector<1x32x32xf32>
    %38 = vector.shape_cast %37 : vector<1x32x32xf32> to vector<32x32xf32>
    %cst_37 = arith.constant dense<0.000000e+00> : vector<33x32xf32>
    %39 = tpu.matmul %36, %38, %cst_37 {dimension_numbers = #tpu.dot_dimension_numbers<[1], [0], [0], [1], [0, 0, 1, 1], [], []>} : vector<33x32xf32>, vector<32x32xf32>, vector<33x32xf32> -> vector<33x32xf32>
    %40 = arith.addf %35, %39 : vector<33x32xf32>
    %c14 = arith.constant 14 : index
    %c0_38 = arith.constant 0 : index
    %41 = vector.load %arg11[%c14, %c0_38] : memref<49x32xf32, #tpu.memory_space<vmem>>, vector<33x32xf32>
    %c6 = arith.constant 6 : index
    %c0_39 = arith.constant 0 : index
    %c0_40 = arith.constant 0 : index
    %42 = vector.load %arg4[%c6, %c0_39, %c0_40] : memref<9x32x32xf32, #tpu.memory_space<vmem>>, vector<1x32x32xf32>
    %43 = vector.shape_cast %42 : vector<1x32x32xf32> to vector<32x32xf32>
    %cst_41 = arith.constant dense<0.000000e+00> : vector<33x32xf32>
    %44 = tpu.matmul %41, %43, %cst_41 {dimension_numbers = #tpu.dot_dimension_numbers<[1], [0], [0], [1], [0, 0, 1, 1], [], []>} : vector<33x32xf32>, vector<32x32xf32>, vector<33x32xf32> -> vector<33x32xf32>
    %45 = arith.addf %40, %44 : vector<33x32xf32>
    %c15 = arith.constant 15 : index
    %c0_42 = arith.constant 0 : index
    %46 = vector.load %arg11[%c15, %c0_42] : memref<49x32xf32, #tpu.memory_space<vmem>>, vector<33x32xf32>
    %c7_43 = arith.constant 7 : index
    %c0_44 = arith.constant 0 : index
    %c0_45 = arith.constant 0 : index
    %47 = vector.load %arg4[%c7_43, %c0_44, %c0_45] : memref<9x32x32xf32, #tpu.memory_space<vmem>>, vector<1x32x32xf32>
    %48 = vector.shape_cast %47 : vector<1x32x32xf32> to vector<32x32xf32>
    %cst_46 = arith.constant dense<0.000000e+00> : vector<33x32xf32>
    %49 = tpu.matmul %46, %48, %cst_46 {dimension_numbers = #tpu.dot_dimension_numbers<[1], [0], [0], [1], [0, 0, 1, 1], [], []>} : vector<33x32xf32>, vector<32x32xf32>, vector<33x32xf32> -> vector<33x32xf32>
    %50 = arith.addf %45, %49 : vector<33x32xf32>
    %c16 = arith.constant 16 : index
    %c0_47 = arith.constant 0 : index
    %51 = vector.load %arg11[%c16, %c0_47] : memref<49x32xf32, #tpu.memory_space<vmem>>, vector<33x32xf32>
    %c8_48 = arith.constant 8 : index
    %c0_49 = arith.constant 0 : index
    %c0_50 = arith.constant 0 : index
    %52 = vector.load %arg4[%c8_48, %c0_49, %c0_50] : memref<9x32x32xf32, #tpu.memory_space<vmem>>, vector<1x32x32xf32>
    %53 = vector.shape_cast %52 : vector<1x32x32xf32> to vector<32x32xf32>
    %cst_51 = arith.constant dense<0.000000e+00> : vector<33x32xf32>
    %54 = tpu.matmul %51, %53, %cst_51 {dimension_numbers = #tpu.dot_dimension_numbers<[1], [0], [0], [1], [0, 0, 1, 1], [], []>} : vector<33x32xf32>, vector<32x32xf32>, vector<33x32xf32> -> vector<33x32xf32>
    %55 = arith.addf %50, %54 : vector<33x32xf32>
    %c0_52 = arith.constant 0 : index
    %c0_53 = arith.constant 0 : index
    %56 = vector.load %arg5[%c0_52, %c0_53] : memref<1x32xf32, #tpu.memory_space<vmem>>, vector<1x32xf32>
    %57 = vector.broadcast %56 : vector<1x32xf32> to vector<33x32xf32>
    %58 = arith.addf %55, %57 : vector<33x32xf32>
    %cst_54 = arith.constant 0.000000e+00 : f32
    %59 = vector.broadcast %cst_54 : f32 to vector<33x32xf32>
    %60 = arith.maximumf %58, %59 : vector<33x32xf32>
    %c0_55 = arith.constant 0 : index
    %c0_56 = arith.constant 0 : index
    %61 = vector.load %arg11[%c0_55, %c0_56] : memref<49x32xf32, #tpu.memory_space<vmem>>, vector<33x32xf32>
    tpu.vector_store %arg11[%c0_55, %c0_56], %60 {strides = array<i32>} : memref<49x32xf32, #tpu.memory_space<vmem>>, vector<33x32xf32>,
    %cst_57 = arith.constant 0.000000e+00 : f32
    %62 = vector.broadcast %cst_57 : f32 to vector<17x32xf32>
    %c0_58 = arith.constant 0 : index
    %c0_59 = arith.constant 0 : index
    %63 = vector.load %arg11[%c0_58, %c0_59] : memref<49x32xf32, #tpu.memory_space<vmem>>, vector<17x32xf32>
    %c0_60 = arith.constant 0 : index
    %c0_61 = arith.constant 0 : index
    %c0_62 = arith.constant 0 : index
    %64 = vector.load %arg6[%c0_60, %c0_61, %c0_62] : memref<9x32x32xf32, #tpu.memory_space<vmem>>, vector<1x32x32xf32>
    %65 = vector.shape_cast %64 : vector<1x32x32xf32> to vector<32x32xf32>
    %cst_63 = arith.constant dense<0.000000e+00> : vector<17x32xf32>
    %66 = tpu.matmul %63, %65, %cst_63 {dimension_numbers = #tpu.dot_dimension_numbers<[1], [0], [0], [1], [0, 0, 1, 1], [], []>} : vector<17x32xf32>, vector<32x32xf32>, vector<17x32xf32> -> vector<17x32xf32>
    %67 = arith.addf %62, %66 : vector<17x32xf32>
    %c1_64 = arith.constant 1 : index
    %c0_65 = arith.constant 0 : index
    %68 = vector.load %arg11[%c1_64, %c0_65] : memref<49x32xf32, #tpu.memory_space<vmem>>, vector<17x32xf32>
    %c1_66 = arith.constant 1 : index
    %c0_67 = arith.constant 0 : index
    %c0_68 = arith.constant 0 : index
    %69 = vector.load %arg6[%c1_66, %c0_67, %c0_68] : memref<9x32x32xf32, #tpu.memory_space<vmem>>, vector<1x32x32xf32>
    %70 = vector.shape_cast %69 : vector<1x32x32xf32> to vector<32x32xf32>
    %cst_69 = arith.constant dense<0.000000e+00> : vector<17x32xf32>
    %71 = tpu.matmul %68, %70, %cst_69 {dimension_numbers = #tpu.dot_dimension_numbers<[1], [0], [0], [1], [0, 0, 1, 1], [], []>} : vector<17x32xf32>, vector<32x32xf32>, vector<17x32xf32> -> vector<17x32xf32>
    %72 = arith.addf %67, %71 : vector<17x32xf32>
    %c2_70 = arith.constant 2 : index
    %c0_71 = arith.constant 0 : index
    %73 = vector.load %arg11[%c2_70, %c0_71] : memref<49x32xf32, #tpu.memory_space<vmem>>, vector<17x32xf32>
    %c2_72 = arith.constant 2 : index
    %c0_73 = arith.constant 0 : index
    %c0_74 = arith.constant 0 : index
    %74 = vector.load %arg6[%c2_72, %c0_73, %c0_74] : memref<9x32x32xf32, #tpu.memory_space<vmem>>, vector<1x32x32xf32>
    %75 = vector.shape_cast %74 : vector<1x32x32xf32> to vector<32x32xf32>
    %cst_75 = arith.constant dense<0.000000e+00> : vector<17x32xf32>
    %76 = tpu.matmul %73, %75, %cst_75 {dimension_numbers = #tpu.dot_dimension_numbers<[1], [0], [0], [1], [0, 0, 1, 1], [], []>} : vector<17x32xf32>, vector<32x32xf32>, vector<17x32xf32> -> vector<17x32xf32>
    %77 = arith.addf %72, %76 : vector<17x32xf32>
    %c7_76 = arith.constant 7 : index
    %c0_77 = arith.constant 0 : index
    %78 = vector.load %arg11[%c7_76, %c0_77] : memref<49x32xf32, #tpu.memory_space<vmem>>, vector<17x32xf32>
    %c3_78 = arith.constant 3 : index
    %c0_79 = arith.constant 0 : index
    %c0_80 = arith.constant 0 : index
    %79 = vector.load %arg6[%c3_78, %c0_79, %c0_80] : memref<9x32x32xf32, #tpu.memory_space<vmem>>, vector<1x32x32xf32>
    %80 = vector.shape_cast %79 : vector<1x32x32xf32> to vector<32x32xf32>
    %cst_81 = arith.constant dense<0.000000e+00> : vector<17x32xf32>
    %81 = tpu.matmul %78, %80, %cst_81 {dimension_numbers = #tpu.dot_dimension_numbers<[1], [0], [0], [1], [0, 0, 1, 1], [], []>} : vector<17x32xf32>, vector<32x32xf32>, vector<17x32xf32> -> vector<17x32xf32>
    %82 = arith.addf %77, %81 : vector<17x32xf32>
    %c8_82 = arith.constant 8 : index
    %c0_83 = arith.constant 0 : index
    %83 = vector.load %arg11[%c8_82, %c0_83] : memref<49x32xf32, #tpu.memory_space<vmem>>, vector<17x32xf32>
    %c4_84 = arith.constant 4 : index
    %c0_85 = arith.constant 0 : index
    %c0_86 = arith.constant 0 : index
    %84 = vector.load %arg6[%c4_84, %c0_85, %c0_86] : memref<9x32x32xf32, #tpu.memory_space<vmem>>, vector<1x32x32xf32>
    %85 = vector.shape_cast %84 : vector<1x32x32xf32> to vector<32x32xf32>
    %cst_87 = arith.constant dense<0.000000e+00> : vector<17x32xf32>
    %86 = tpu.matmul %83, %85, %cst_87 {dimension_numbers = #tpu.dot_dimension_numbers<[1], [0], [0], [1], [0, 0, 1, 1], [], []>} : vector<17x32xf32>, vector<32x32xf32>, vector<17x32xf32> -> vector<17x32xf32>
    %87 = arith.addf %82, %86 : vector<17x32xf32>
    %c9_88 = arith.constant 9 : index
    %c0_89 = arith.constant 0 : index
    %88 = vector.load %arg11[%c9_88, %c0_89] : memref<49x32xf32, #tpu.memory_space<vmem>>, vector<17x32xf32>
    %c5_90 = arith.constant 5 : index
    %c0_91 = arith.constant 0 : index
    %c0_92 = arith.constant 0 : index
    %89 = vector.load %arg6[%c5_90, %c0_91, %c0_92] : memref<9x32x32xf32, #tpu.memory_space<vmem>>, vector<1x32x32xf32>
    %90 = vector.shape_cast %89 : vector<1x32x32xf32> to vector<32x32xf32>
    %cst_93 = arith.constant dense<0.000000e+00> : vector<17x32xf32>
    %91 = tpu.matmul %88, %90, %cst_93 {dimension_numbers = #tpu.dot_dimension_numbers<[1], [0], [0], [1], [0, 0, 1, 1], [], []>} : vector<17x32xf32>, vector<32x32xf32>, vector<17x32xf32> -> vector<17x32xf32>
    %92 = arith.addf %87, %91 : vector<17x32xf32>
    %c14_94 = arith.constant 14 : index
    %c0_95 = arith.constant 0 : index
    %93 = vector.load %arg11[%c14_94, %c0_95] : memref<49x32xf32, #tpu.memory_space<vmem>>, vector<17x32xf32>
    %c6_96 = arith.constant 6 : index
    %c0_97 = arith.constant 0 : index
    %c0_98 = arith.constant 0 : index
    %94 = vector.load %arg6[%c6_96, %c0_97, %c0_98] : memref<9x32x32xf32, #tpu.memory_space<vmem>>, vector<1x32x32xf32>
    %95 = vector.shape_cast %94 : vector<1x32x32xf32> to vector<32x32xf32>
    %cst_99 = arith.constant dense<0.000000e+00> : vector<17x32xf32>
    %96 = tpu.matmul %93, %95, %cst_99 {dimension_numbers = #tpu.dot_dimension_numbers<[1], [0], [0], [1], [0, 0, 1, 1], [], []>} : vector<17x32xf32>, vector<32x32xf32>, vector<17x32xf32> -> vector<17x32xf32>
    %97 = arith.addf %92, %96 : vector<17x32xf32>
    %c15_100 = arith.constant 15 : index
    %c0_101 = arith.constant 0 : index
    %98 = vector.load %arg11[%c15_100, %c0_101] : memref<49x32xf32, #tpu.memory_space<vmem>>, vector<17x32xf32>
    %c7_102 = arith.constant 7 : index
    %c0_103 = arith.constant 0 : index
    %c0_104 = arith.constant 0 : index
    %99 = vector.load %arg6[%c7_102, %c0_103, %c0_104] : memref<9x32x32xf32, #tpu.memory_space<vmem>>, vector<1x32x32xf32>
    %100 = vector.shape_cast %99 : vector<1x32x32xf32> to vector<32x32xf32>
    %cst_105 = arith.constant dense<0.000000e+00> : vector<17x32xf32>
    %101 = tpu.matmul %98, %100, %cst_105 {dimension_numbers = #tpu.dot_dimension_numbers<[1], [0], [0], [1], [0, 0, 1, 1], [], []>} : vector<17x32xf32>, vector<32x32xf32>, vector<17x32xf32> -> vector<17x32xf32>
    %102 = arith.addf %97, %101 : vector<17x32xf32>
    %c16_106 = arith.constant 16 : index
    %c0_107 = arith.constant 0 : index
    %103 = vector.load %arg11[%c16_106, %c0_107] : memref<49x32xf32, #tpu.memory_space<vmem>>, vector<17x32xf32>
    %c8_108 = arith.constant 8 : index
    %c0_109 = arith.constant 0 : index
    %c0_110 = arith.constant 0 : index
    %104 = vector.load %arg6[%c8_108, %c0_109, %c0_110] : memref<9x32x32xf32, #tpu.memory_space<vmem>>, vector<1x32x32xf32>
    %105 = vector.shape_cast %104 : vector<1x32x32xf32> to vector<32x32xf32>
    %cst_111 = arith.constant dense<0.000000e+00> : vector<17x32xf32>
    %106 = tpu.matmul %103, %105, %cst_111 {dimension_numbers = #tpu.dot_dimension_numbers<[1], [0], [0], [1], [0, 0, 1, 1], [], []>} : vector<17x32xf32>, vector<32x32xf32>, vector<17x32xf32> -> vector<17x32xf32>
    %107 = arith.addf %102, %106 : vector<17x32xf32>
    %c0_112 = arith.constant 0 : index
    %c0_113 = arith.constant 0 : index
    %108 = vector.load %arg7[%c0_112, %c0_113] : memref<1x32xf32, #tpu.memory_space<vmem>>, vector<1x32xf32>
    %109 = vector.broadcast %108 : vector<1x32xf32> to vector<17x32xf32>
    %110 = arith.addf %107, %109 : vector<17x32xf32>
    %cst_114 = arith.constant 0.000000e+00 : f32
    %111 = vector.broadcast %cst_114 : f32 to vector<17x32xf32>
    %112 = arith.maximumf %110, %111 : vector<17x32xf32>
    %c0_115 = arith.constant 0 : index
    %c0_116 = arith.constant 0 : index
    %113 = vector.load %arg11[%c0_115, %c0_116] : memref<49x32xf32, #tpu.memory_space<vmem>>, vector<17x32xf32>
    tpu.vector_store %arg11[%c0_115, %c0_116], %112 {strides = array<i32>} : memref<49x32xf32, #tpu.memory_space<vmem>>, vector<17x32xf32>,
    %cst_117 = arith.constant 0.000000e+00 : f32
    %114 = vector.broadcast %cst_117 : f32 to vector<1x32xf32>
    %c0_118 = arith.constant 0 : index
    %c0_119 = arith.constant 0 : index
    %115 = vector.load %arg11[%c0_118, %c0_119] : memref<49x32xf32, #tpu.memory_space<vmem>>, vector<1x32xf32>
    %c0_120 = arith.constant 0 : index
    %c0_121 = arith.constant 0 : index
    %c0_122 = arith.constant 0 : index
    %116 = vector.load %arg8[%c0_120, %c0_121, %c0_122] : memref<9x32x32xf32, #tpu.memory_space<vmem>>, vector<1x32x32xf32>
    %117 = vector.shape_cast %116 : vector<1x32x32xf32> to vector<32x32xf32>
    %cst_123 = arith.constant dense<0.000000e+00> : vector<1x32xf32>
    %118 = tpu.matmul %115, %117, %cst_123 {dimension_numbers = #tpu.dot_dimension_numbers<[1], [0], [0], [1], [0, 0, 1, 1], [], []>} : vector<1x32xf32>, vector<32x32xf32>, vector<1x32xf32> -> vector<1x32xf32>
    %119 = arith.addf %114, %118 : vector<1x32xf32>
    %c1_124 = arith.constant 1 : index
    %c0_125 = arith.constant 0 : index
    %120 = vector.load %arg11[%c1_124, %c0_125] : memref<49x32xf32, #tpu.memory_space<vmem>>, vector<1x32xf32>
    %c1_126 = arith.constant 1 : index
    %c0_127 = arith.constant 0 : index
    %c0_128 = arith.constant 0 : index
    %121 = vector.load %arg8[%c1_126, %c0_127, %c0_128] : memref<9x32x32xf32, #tpu.memory_space<vmem>>, vector<1x32x32xf32>
    %122 = vector.shape_cast %121 : vector<1x32x32xf32> to vector<32x32xf32>
    %cst_129 = arith.constant dense<0.000000e+00> : vector<1x32xf32>
    %123 = tpu.matmul %120, %122, %cst_129 {dimension_numbers = #tpu.dot_dimension_numbers<[1], [0], [0], [1], [0, 0, 1, 1], [], []>} : vector<1x32xf32>, vector<32x32xf32>, vector<1x32xf32> -> vector<1x32xf32>
    %124 = arith.addf %119, %123 : vector<1x32xf32>
    %c2_130 = arith.constant 2 : index
    %c0_131 = arith.constant 0 : index
    %125 = vector.load %arg11[%c2_130, %c0_131] : memref<49x32xf32, #tpu.memory_space<vmem>>, vector<1x32xf32>
    %c2_132 = arith.constant 2 : index
    %c0_133 = arith.constant 0 : index
    %c0_134 = arith.constant 0 : index
    %126 = vector.load %arg8[%c2_132, %c0_133, %c0_134] : memref<9x32x32xf32, #tpu.memory_space<vmem>>, vector<1x32x32xf32>
    %127 = vector.shape_cast %126 : vector<1x32x32xf32> to vector<32x32xf32>
    %cst_135 = arith.constant dense<0.000000e+00> : vector<1x32xf32>
    %128 = tpu.matmul %125, %127, %cst_135 {dimension_numbers = #tpu.dot_dimension_numbers<[1], [0], [0], [1], [0, 0, 1, 1], [], []>} : vector<1x32xf32>, vector<32x32xf32>, vector<1x32xf32> -> vector<1x32xf32>
    %129 = arith.addf %124, %128 : vector<1x32xf32>
    %c7_136 = arith.constant 7 : index
    %c0_137 = arith.constant 0 : index
    %130 = vector.load %arg11[%c7_136, %c0_137] : memref<49x32xf32, #tpu.memory_space<vmem>>, vector<1x32xf32>
    %c3_138 = arith.constant 3 : index
    %c0_139 = arith.constant 0 : index
    %c0_140 = arith.constant 0 : index
    %131 = vector.load %arg8[%c3_138, %c0_139, %c0_140] : memref<9x32x32xf32, #tpu.memory_space<vmem>>, vector<1x32x32xf32>
    %132 = vector.shape_cast %131 : vector<1x32x32xf32> to vector<32x32xf32>
    %cst_141 = arith.constant dense<0.000000e+00> : vector<1x32xf32>
    %133 = tpu.matmul %130, %132, %cst_141 {dimension_numbers = #tpu.dot_dimension_numbers<[1], [0], [0], [1], [0, 0, 1, 1], [], []>} : vector<1x32xf32>, vector<32x32xf32>, vector<1x32xf32> -> vector<1x32xf32>
    %134 = arith.addf %129, %133 : vector<1x32xf32>
    %c8_142 = arith.constant 8 : index
    %c0_143 = arith.constant 0 : index
    %135 = vector.load %arg11[%c8_142, %c0_143] : memref<49x32xf32, #tpu.memory_space<vmem>>, vector<1x32xf32>
    %c4_144 = arith.constant 4 : index
    %c0_145 = arith.constant 0 : index
    %c0_146 = arith.constant 0 : index
    %136 = vector.load %arg8[%c4_144, %c0_145, %c0_146] : memref<9x32x32xf32, #tpu.memory_space<vmem>>, vector<1x32x32xf32>
    %137 = vector.shape_cast %136 : vector<1x32x32xf32> to vector<32x32xf32>
    %cst_147 = arith.constant dense<0.000000e+00> : vector<1x32xf32>
    %138 = tpu.matmul %135, %137, %cst_147 {dimension_numbers = #tpu.dot_dimension_numbers<[1], [0], [0], [1], [0, 0, 1, 1], [], []>} : vector<1x32xf32>, vector<32x32xf32>, vector<1x32xf32> -> vector<1x32xf32>
    %139 = arith.addf %134, %138 : vector<1x32xf32>
    %c9_148 = arith.constant 9 : index
    %c0_149 = arith.constant 0 : index
    %140 = vector.load %arg11[%c9_148, %c0_149] : memref<49x32xf32, #tpu.memory_space<vmem>>, vector<1x32xf32>
    %c5_150 = arith.constant 5 : index
    %c0_151 = arith.constant 0 : index
    %c0_152 = arith.constant 0 : index
    %141 = vector.load %arg8[%c5_150, %c0_151, %c0_152] : memref<9x32x32xf32, #tpu.memory_space<vmem>>, vector<1x32x32xf32>
    %142 = vector.shape_cast %141 : vector<1x32x32xf32> to vector<32x32xf32>
    %cst_153 = arith.constant dense<0.000000e+00> : vector<1x32xf32>
    %143 = tpu.matmul %140, %142, %cst_153 {dimension_numbers = #tpu.dot_dimension_numbers<[1], [0], [0], [1], [0, 0, 1, 1], [], []>} : vector<1x32xf32>, vector<32x32xf32>, vector<1x32xf32> -> vector<1x32xf32>
    %144 = arith.addf %139, %143 : vector<1x32xf32>
    %c14_154 = arith.constant 14 : index
    %c0_155 = arith.constant 0 : index
    %145 = vector.load %arg11[%c14_154, %c0_155] : memref<49x32xf32, #tpu.memory_space<vmem>>, vector<1x32xf32>
    %c6_156 = arith.constant 6 : index
    %c0_157 = arith.constant 0 : index
    %c0_158 = arith.constant 0 : index
    %146 = vector.load %arg8[%c6_156, %c0_157, %c0_158] : memref<9x32x32xf32, #tpu.memory_space<vmem>>, vector<1x32x32xf32>
    %147 = vector.shape_cast %146 : vector<1x32x32xf32> to vector<32x32xf32>
    %cst_159 = arith.constant dense<0.000000e+00> : vector<1x32xf32>
    %148 = tpu.matmul %145, %147, %cst_159 {dimension_numbers = #tpu.dot_dimension_numbers<[1], [0], [0], [1], [0, 0, 1, 1], [], []>} : vector<1x32xf32>, vector<32x32xf32>, vector<1x32xf32> -> vector<1x32xf32>
    %149 = arith.addf %144, %148 : vector<1x32xf32>
    %c15_160 = arith.constant 15 : index
    %c0_161 = arith.constant 0 : index
    %150 = vector.load %arg11[%c15_160, %c0_161] : memref<49x32xf32, #tpu.memory_space<vmem>>, vector<1x32xf32>
    %c7_162 = arith.constant 7 : index
    %c0_163 = arith.constant 0 : index
    %c0_164 = arith.constant 0 : index
    %151 = vector.load %arg8[%c7_162, %c0_163, %c0_164] : memref<9x32x32xf32, #tpu.memory_space<vmem>>, vector<1x32x32xf32>
    %152 = vector.shape_cast %151 : vector<1x32x32xf32> to vector<32x32xf32>
    %cst_165 = arith.constant dense<0.000000e+00> : vector<1x32xf32>
    %153 = tpu.matmul %150, %152, %cst_165 {dimension_numbers = #tpu.dot_dimension_numbers<[1], [0], [0], [1], [0, 0, 1, 1], [], []>} : vector<1x32xf32>, vector<32x32xf32>, vector<1x32xf32> -> vector<1x32xf32>
    %154 = arith.addf %149, %153 : vector<1x32xf32>
    %c16_166 = arith.constant 16 : index
    %c0_167 = arith.constant 0 : index
    %155 = vector.load %arg11[%c16_166, %c0_167] : memref<49x32xf32, #tpu.memory_space<vmem>>, vector<1x32xf32>
    %c8_168 = arith.constant 8 : index
    %c0_169 = arith.constant 0 : index
    %c0_170 = arith.constant 0 : index
    %156 = vector.load %arg8[%c8_168, %c0_169, %c0_170] : memref<9x32x32xf32, #tpu.memory_space<vmem>>, vector<1x32x32xf32>
    %157 = vector.shape_cast %156 : vector<1x32x32xf32> to vector<32x32xf32>
    %cst_171 = arith.constant dense<0.000000e+00> : vector<1x32xf32>
    %158 = tpu.matmul %155, %157, %cst_171 {dimension_numbers = #tpu.dot_dimension_numbers<[1], [0], [0], [1], [0, 0, 1, 1], [], []>} : vector<1x32xf32>, vector<32x32xf32>, vector<1x32xf32> -> vector<1x32xf32>
    %159 = arith.addf %154, %158 : vector<1x32xf32>
    %c0_172 = arith.constant 0 : index
    %c0_173 = arith.constant 0 : index
    %160 = vector.load %arg9[%c0_172, %c0_173] : memref<1x32xf32, #tpu.memory_space<vmem>>, vector<1x32xf32>
    %161 = arith.addf %159, %160 : vector<1x32xf32>
    %cst_174 = arith.constant 0.000000e+00 : f32
    %162 = vector.broadcast %cst_174 : f32 to vector<1x32xf32>
    %163 = arith.maximumf %161, %162 : vector<1x32xf32>
    %c0_175 = arith.constant 0 : index
    %c0_176 = arith.constant 0 : index
    %c0_177 = arith.constant 0 : index
    %164 = vector.load %arg10[%c0_175, %c0_176, %c0_177] : memref<1x1x32xf32, #tpu.memory_space<vmem>>, vector<1x1x32xf32>
    %165 = vector.shape_cast %164 : vector<1x1x32xf32> to vector<1x32xf32>
    %166 = vector.shape_cast %163 : vector<1x32xf32> to vector<1x1x32xf32>
    tpu.vector_store %arg10[%c0_175, %c0_176, %c0_177], %166 {strides = array<i32>} : memref<1x1x32xf32, #tpu.memory_space<vmem>>, vector<1x1x32xf32>,
    return
  }
  func.func @transform_0(%arg0: i32) -> (i32, i32, i32) {
    %c0_i32 = arith.constant 0 : i32
    %c0_i32_0 = arith.constant 0 : i32
    %c0_i32_1 = arith.constant 0 : i32
    return %arg0, %c0_i32, %c0_i32_0 : i32, i32, i32
  }
  func.func @transform_1(%arg0: i32) -> (i32, i32) {
    %c0_i32 = arith.constant 0 : i32
    %c0_i32_0 = arith.constant 0 : i32
    %c0_i32_1 = arith.constant 0 : i32
    return %c0_i32, %c0_i32_0 : i32, i32
  }
  func.func @transform_2(%arg0: i32) -> (i32, i32) {
    %c0_i32 = arith.constant 0 : i32
    %c0_i32_0 = arith.constant 0 : i32
    %c0_i32_1 = arith.constant 0 : i32
    return %c0_i32, %c0_i32_0 : i32, i32
  }
  func.func @transform_3(%arg0: i32) -> (i32, i32, i32) {
    %c0_i32 = arith.constant 0 : i32
    %c0_i32_0 = arith.constant 0 : i32
    %c0_i32_1 = arith.constant 0 : i32
    %c0_i32_2 = arith.constant 0 : i32
    return %c0_i32, %c0_i32_0, %c0_i32_1 : i32, i32, i32
  }
  func.func @transform_4(%arg0: i32) -> (i32, i32) {
    %c0_i32 = arith.constant 0 : i32
    %c0_i32_0 = arith.constant 0 : i32
    %c0_i32_1 = arith.constant 0 : i32
    return %c0_i32, %c0_i32_0 : i32, i32
  }
  func.func @transform_5(%arg0: i32) -> (i32, i32, i32) {
    %c0_i32 = arith.constant 0 : i32
    %c0_i32_0 = arith.constant 0 : i32
    %c0_i32_1 = arith.constant 0 : i32
    %c0_i32_2 = arith.constant 0 : i32
    return %c0_i32, %c0_i32_0, %c0_i32_1 : i32, i32, i32
  }
  func.func @transform_6(%arg0: i32) -> (i32, i32) {
    %c0_i32 = arith.constant 0 : i32
    %c0_i32_0 = arith.constant 0 : i32
    %c0_i32_1 = arith.constant 0 : i32
    return %c0_i32, %c0_i32_0 : i32, i32
  }
  func.func @transform_7(%arg0: i32) -> (i32, i32, i32) {
    %c0_i32 = arith.constant 0 : i32
    %c0_i32_0 = arith.constant 0 : i32
    %c0_i32_1 = arith.constant 0 : i32
    %c0_i32_2 = arith.constant 0 : i32
    return %c0_i32, %c0_i32_0, %c0_i32_1 : i32, i32, i32
  }
  func.func @transform_8(%arg0: i32) -> (i32, i32) {
    %c0_i32 = arith.constant 0 : i32
    %c0_i32_0 = arith.constant 0 : i32
    %c0_i32_1 = arith.constant 0 : i32
    return %c0_i32, %c0_i32_0 : i32, i32
  }
  func.func @transform_9(%arg0: i32) -> (i32, i32, i32) {
    %c0_i32 = arith.constant 0 : i32
    %c0_i32_0 = arith.constant 0 : i32
    %c0_i32_1 = arith.constant 0 : i32
    return %arg0, %c0_i32, %c0_i32_0 : i32, i32, i32
  }
}

</mosaic_0001>

<bundles_post_ra>
// kernel: encoder_forward.1
= control target key start
LH: loop header
LB: loop body
LE: loop exit
PB: predicated region body
PF: predicated region fallthrough
CT: control target
= control target key end

     0   :  { %s1992_s30 = smov 0   ;;  %s2530_s0 = inlined_call_operand.vmem [shape: f32[2,49,36], index: 0, kind: input, shape index: {}]   ;;  %s2531_s1 = inlined_call_operand.vmem [shape: f32[36,32], index: 1, kind: input, shape index: {}]   ;;  %s2532_s2 = inlined_call_operand.vmem [shape: f32[1,32], index: 2, kind: input, shape index: {}]   ;;  %s2533_s3 = inlined_call_operand.vmem [shape: f32[9,32,32], index: 3, kind: input, shape index: {}]   ;;  %s2534_s4 = inlined_call_operand.vmem [shape: f32[1,32], index: 4, kind: input, shape index: {}]   ;;  %s2535_s5 = inlined_call_operand.vmem [shape: f32[9,32,32], index: 5, kind: input, shape index: {}]   ;;  %s2536_s6 = inlined_call_operand.vmem [shape: f32[1,32], index: 6, kind: input, shape index: {}]   ;;  %s2537_s7 = inlined_call_operand.vmem [shape: f32[9,32,32], index: 7, kind: input, shape index: {}]   ;;  %s2538_s8 = inlined_call_operand.vmem [shape: f32[1,32], index: 8, kind: input, shape index: {}]   ;;  %s2539_s9 = inlined_call_operand.vmem [shape: f32[2,1,32], index: 9, kind: output, shape index: {}]  }
   0x1 LB: > { %s1729_s10 = sadd.s32 4294967295, %s1940_s30   ;;  %p1733_p0 = scmp.ge.s32.totalorder %s1940_s30, 1  ;;  %s1940_s30 = sphi %s1992_s30, %s19_s30  }
   0x2   : > { %p287_p1 = scmp.lt.s32.totalorder %s1940_s30, 3 }
   0x4   : > { %p288_p2 = pnand %p1733_p0, %p287_p1 }
   0x5   : > { %p321_p3 = scmp.lt.s32.totalorder (!%p288_p2), %s1729_s10, 1 }
   0x6   : > { %291 = sbr.rel (%p288_p2) target bundleno = 752 (0x2f0), region = 56 }
   0xb   : > { %v340_v0 = vld [vmem:[%s2531_s1 + $0x20] sm:$0xf]  ;;  %vm367_vm0 = vcmask 1043456   ;;  %v339_v1 = vld [vmem:[%s2531_s1 + $0x18] sm:$0xff]  ;;  %v338_v2 = vld [vmem:[%s2531_s1 + $0x10] sm:$0xff]  ;;  %s2541_s10 = smov (!%p321_p3, %s1729_s10), 1 }
   0xc   : > { %1735 = vmatpush.msk.msra.mxu0 %vm367_vm0, %v340_v0  ;;  %v337_v3 = vld [vmem:[%s2531_s1 + $0x8] sm:$0xff]  ;;  %s1922_s19 = smul.u32 56, %s2541_s10  ;;  %v336_v4 = vld [vmem:[%s2531_s1] sm:$0xff]  ;;  %vm345_vm1 = vcmask 293888   ;;  %v433_v12 = vld [vmem:[%s2533_s3 + $0x18] sm:$0xff]  ;;  %vm416_vm2 = vcmask 261120   ;;  %s328_s23 = scalar_lea.vmem %s2539_s9, %s2541_s10 }
   0xd   : > { %518 = vmatpush.msra.mxu2 %v433_v12  ;;  %v432_v13 = vld [vmem:[%s2533_s3 + $0x10] sm:$0xff]  ;;  %v431_v14 = vld [vmem:[%s2533_s3 + $0x8] sm:$0xff]  ;;  %v430_v15 = vld [vmem:[%s2533_s3] sm:$0xff]  ;;  %vm423_vm3 = vcmask 253952  }
   0xe   : > { %383 = vmatpush.msra.mxu0 %v339_v1  ;;  %s325_s24 = scalar_lea.vmem %s2530_s0, %s1922_s19  ;;  %v1746_v16 = vld [vmem:[%s2533_s3 + $0x38] sm:$0xff]  ;;  %v1745_v18 = vld [vmem:[%s2533_s3 + $0x30] sm:$0xff]  ;;  %v1744_v20 = vld [vmem:[%s2533_s3 + $0x28] sm:$0xff] }
   0xf   : > { %v329_v5 = vld [vmem:[%s325_s24] sm:$0xff]  ;;  %v330_v6 = vld [vmem:[%s325_s24 + $0x8] sm:$0xff]  ;;  %v331_v7 = vld [vmem:[%s325_s24 + $0x10] sm:$0xff]  ;;  %519 = vmatpush.msra.mxu2 %v432_v13  ;;  %471 = vmatpush.msra.mxu1 %v1746_v16 }
  0x10   : > { %384 = vmatpush.msra.mxu0 %v338_v2  ;;  %v332_v8 = vld [vmem:[%s325_s24 + $0x18] sm:$0xff]  ;;  %v333_v9 = vld [vmem:[%s325_s24 + $0x20] sm:$0xff]  ;;  %v334_v10 = vld [vmem:[%s325_s24 + $0x28] sm:$0xff] }
  0x11   : > { %v335_v11 = vld [vmem:[%s325_s24 + $0x30] sm:$0x1]  ;;  %520 = vmatpush.msra.mxu2 %v431_v14  ;;  %v1760_v17 = vld [vmem:[%s2533_s3 + $0x58] sm:$0xff]  ;;  %472 = vmatpush.msra.mxu1 %v1745_v18  ;;  %v1758_v21 = vld [vmem:[%s2533_s3 + $0x48] sm:$0xff] }
  0x12   : > { %385 = vmatpush.msra.mxu0 %v337_v3  ;;  %575 = vmatpush.msra.mxu3 %v1760_v17  ;;  %v1759_v19 = vld [vmem:[%s2533_s3 + $0x50] sm:$0xff]  ;;  %v1743_v22 = vld [vmem:[%s2533_s3 + $0x20] sm:$0xff]  ;;  %v1778_v24 = vld [vmem:[%s2533_s3 + $0x98] sm:$0xff] }
  0x13   : > { %521 = vmatpush.msra.mxu2 %v430_v15  ;;  %473 = vmatpush.msra.mxu1 %v1744_v20  ;;  %v1757_v23 = vld [vmem:[%s2533_s3 + $0x40] sm:$0xff]  ;;  %v1769_v25 = vld [vmem:[%s2533_s3 + $0x78] sm:$0xff]  ;;  %v1795_v27 = vld [vmem:[%s2533_s3 + $0xd0] sm:$0xff] }
  0x14   : > { %386 = vmatpush.msra.mxu0 %v336_v4  ;;  %576 = vmatpush.msra.mxu3 %v1759_v19  ;;  %v1796_v26 = vld [vmem:[%s2533_s3 + $0xd8] sm:$0xff]  ;;  %v1794_v28 = vld [vmem:[%s2533_s3 + $0xc8] sm:$0xff]  ;;  %v1793_v29 = vld [vmem:[%s2533_s3 + $0xc0] sm:$0xff] }
  0x15   : > { %1736 = vmatmul.msk.f32.vlgmr.msra.gmra.mxu0 %vm345_vm1, %v329_v5  ;;  %474 = vmatpush.msra.mxu1 %v1743_v22  ;;  %v2078_v30 = vld [vmem:[%s2532_s2] ss:$0 sm:$0xff]  ;;  %v1777_v31 = vld [vmem:[%s2533_s3 + $0x90] sm:$0xff]  ;;  %v1776_v36 = vld [vmem:[%s2533_s3 + $0x88] sm:$0xff] }
  0x16   : > { %577 = vmatpush.msra.mxu3 %v1758_v21  ;;  %699 = vmatpush.msrb.mxu2 %v1778_v24  ;;  %v1768_v32 = vld [vmem:[%s2533_s3 + $0x70] sm:$0xff]  ;;  %v1767_v41 = vld [vmem:[%s2533_s3 + $0x68] sm:$0xff]  ;;  %v1775_v42 = vld [vmem:[%s2533_s3 + $0x80] sm:$0xff] }
  0x17   : > { %637 = vmatpush.msrb.mxu1 %v1769_v25  ;;  %823 = vmatpush.msrb.mxu0 %v1796_v26  ;;  %v1766_v43 = vld [vmem:[%s2533_s3 + $0x60] sm:$0xff]  ;;  %v1787_v44 = vld [vmem:[%s2533_s3 + $0xb8] sm:$0xff]  ;;  %v1786_v51 = vld [vmem:[%s2533_s3 + $0xb0] sm:$0xff] }
  0x18   : > { %578 = vmatpush.msra.mxu3 %v1757_v23  ;;  %700 = vmatpush.msrb.mxu2 %v1777_v31  ;;  %v1814_v52 = vld [vmem:[%s2533_s3 + $0x118] sm:$0xff]  ;;  %v1785_v53 = vld [vmem:[%s2533_s3 + $0xa8] sm:$0xff]  ;;  %v1784_v55 = vld [vmem:[%s2533_s3 + $0xa0] sm:$0xff] }
  0x19   : > { %824 = vmatpush.msrb.mxu0 %v1795_v27  ;;  %638 = vmatpush.msrb.mxu1 %v1768_v32  ;;  %v1805_v62 = vld [vmem:[%s2533_s3 + $0xf8] sm:$0xff]  ;;  %v1813_v63 = vld [vmem:[%s2533_s3 + $0x110] sm:$0xff]  ;;  %v1812_v15 = vld [vmem:[%s2533_s3 + $0x108] sm:$0xff] }
  0x1a   : > { %701 = vmatpush.msrb.mxu2 %v1776_v36  ;;  %761 = vmatpush.msrb.mxu3 %v1787_v44  ;;  %v1803_v16 = vld [vmem:[%s2533_s3 + $0xe8] sm:$0xff]  ;;  %v1811_v20 = vld [vmem:[%s2533_s3 + $0x100] sm:$0xff] }
  0x1b   : > { %825 = vmatpush.msrb.mxu0 %v1794_v28  ;;  %639 = vmatpush.msrb.mxu1 %v1767_v41  ;;  %v1802_v21 = vld [vmem:[%s2533_s3 + $0xe0] sm:$0xff] }
  0x1c   : > { %702 = vmatpush.msrb.mxu2 %v1775_v42  ;;  %762 = vmatpush.msrb.mxu3 %v1786_v51 }
  0x1d   : > { %1737 = vmatmul.msk.f32.gmra.mxu0 %vm345_vm1, %v330_v6  ;;  %640 = vmatpush.msrb.mxu1 %v1766_v43 }
  0x1e   : > { %826 = vmatpush.msrb.mxu0 %v1793_v29  ;;  %763 = vmatpush.msrb.mxu3 %v1785_v53 }
  0x20   : > { %764 = vmatpush.msrb.mxu3 %v1784_v55 }
  0x25   : > { %1738 = vmatmul.msk.f32.gmra.mxu0 %vm345_vm1, %v331_v7  ;;  %v1804_v7 = vld [vmem:[%s2533_s3 + $0xf0] sm:$0xff] }
  0x2d   : > { %1739 = vmatmul.msk.f32.gmra.mxu0 %vm345_vm1, %v332_v8 }
  0x35   : > { %1740 = vmatmul.msk.f32.gmra.mxu0 %vm345_vm1, %v333_v9 }
  0x3d   : > { %1741 = vmatmul.msk.f32.gmra.mxu0 %vm345_vm1, %v334_v10 }
  0x45   : > { %1742 = vmatmul.msk.f32.gmra.mxu0 %vm345_vm1, %v335_v11 }
  0x92   : > { %v388_v33 = vpop.f32.mrf.mxu0 }
  0x93   : > { %v389_v34 = vadd.f32 %v2078_v30, %v388_v33 }
  0x95   : > { %v409_v35 = vmax.f32 %v389_v34, 0.0 }
  0x97   : > { %417 = vst.msk [vmem:[#allocation2] sm:$0xff] %vm416_vm2, %v409_v35 }
  0x9a   : > { %v391_v37 = vpop.f32.mrf.mxu0 }
  0x9b   : > { %v392_v38 = vadd.f32 %v2078_v30, %v391_v37 }
  0x9d   : > { %v410_v39 = vmax.f32 %v392_v38, 0.0 }
  0x9e   : > { %v425_v40 = vld [vmem:[#allocation2] sm:$0xff] }
  0x9f   : > { %418 = vst.msk [vmem:[#allocation2 + $0x8] sm:$0xff] %vm416_vm2, %v410_v39  ;;  %1752 = vmatmul.msk.f32.vlgmr.msra.gmra.mxu2 %vm416_vm2, %v425_v40 }
  0xa0   : > { %947 = vmatpush.msra.mxu2 %v1814_v52 }
  0xa2   : > { %v394_v45 = vpop.f32.mrf.mxu0  ;;  %948 = vmatpush.msra.mxu2 %v1813_v63 }
  0xa3   : > { %v395_v46 = vadd.f32 %v2078_v30, %v394_v45 }
  0xa4   : > { %949 = vmatpush.msra.mxu2 %v1812_v15 }
  0xa5   : > { %v411_v47 = vmax.f32 %v395_v46, 0.0 }
  0xa6   : > { %v434_v48 = vld [vmem:[#allocation2 + $0x1] sm:$0xff]  ;;  %950 = vmatpush.msra.mxu2 %v1811_v20 }
  0xa7   : > { %v2107_v49 = vld [vmem:[#allocation2 + $0x8] sm:$0xff]  ;;  %419 = vst.msk [vmem:[#allocation2 + $0x10] sm:$0xff] %vm416_vm2, %v411_v47  ;;  %1747 = vmatmul.msk.f32.vlgmr.msra.gmra.mxu1 %vm416_vm2, %v434_v48 }
  0xa8   : > { %v538_v50 = vld [vmem:[#allocation2 + $0x2] sm:$0xff]  ;;  %1753 = vmatmul.msk.f32.gmra.mxu2 %vm416_vm2, %v2107_v49  ;;  %885 = vmatpush.msra.mxu1 %v1805_v62 }
  0xa9   : > { %1761 = vmatmul.msk.f32.vlgmr.msra.gmra.mxu3 %vm416_vm2, %v538_v50  ;;  %v600_v23 = vld [vmem:[#allocation2 + $0x7] sm:$0xff] }
  0xaa   : > { %v397_v54 = vpop.f32.mrf.mxu0  ;;  %886 = vmatpush.msra.mxu1 %v1804_v7 }
  0xab   : > { %v398_v56 = vadd.f32 %v2078_v30, %v397_v54 }
  0xac   : > { %887 = vmatpush.msra.mxu1 %v1803_v16 }
  0xad   : > { %v412_v57 = vmax.f32 %v398_v56, 0.0 }
  0xae   : > { %v435_v58 = vld [vmem:[#allocation2 + $0x9] sm:$0xff]  ;;  %888 = vmatpush.msra.mxu1 %v1802_v21 }
  0xaf   : > { %v2127_v59 = vld [vmem:[#allocation2 + $0x10] sm:$0xff]  ;;  %420 = vst.msk [vmem:[#allocation2 + $0x18] sm:$0xff] %vm416_vm2, %v412_v57  ;;  %1748 = vmatmul.msk.f32.gmra.mxu1 %vm416_vm2, %v435_v58  ;;  %v1823_v57 = vld [vmem:[%s2535_s5 + $0x38] sm:$0xff]  ;;  %v1838_v21 = vld [vmem:[%s2535_s5 + $0x68] sm:$0xff] }
  0xb0   : > { %v539_v60 = vld [vmem:[#allocation2 + $0xa] sm:$0xff]  ;;  %1754 = vmatmul.msk.f32.gmra.mxu2 %vm416_vm2, %v2127_v59  ;;  %1027 = vmatpush.msra.mxu3 %v1823_v57  ;;  %v1851_v57 = vld [vmem:[%s2535_s5 + $0xa0] sm:$0xff] }
  0xb1   : > { %v786_v61 = vld [vmem:[#allocation2 + $0xe] sm:$0xff]  ;;  %1762 = vmatmul.msk.f32.gmra.mxu3 %vm416_vm2, %v539_v60 }
  0xb2   : > { %1797 = vmatmul.msk.f32.vlgmr.msrb.gmra.mxu0 %vm416_vm2, %v786_v61  ;;  %v400_v0 = vpop.f32.mrf.mxu0  ;;  %v601_v24 = vld [vmem:[#allocation2 + $0xf] sm:$0xff] }
  0xb3   : > { %v401_v1 = vadd.f32 %v2078_v30, %v400_v0  ;;  %v1822_v60 = vld [vmem:[%s2535_s5 + $0x30] sm:$0xff] }
  0xb4   : > { %1028 = vmatpush.msra.mxu3 %v1822_v60  ;;  %v1830_v60 = vld [vmem:[%s2535_s5 + $0x40] sm:$0xff] }
  0xb5   : > { %v413_v2 = vmax.f32 %v401_v1, 0.0 }
  0xb6   : > { %v436_v3 = vld [vmem:[#allocation2 + $0x11] sm:$0xff] }
  0xb7   : > { %v2142_v4 = vld [vmem:[#allocation2 + $0x18] sm:$0xff]  ;;  %421 = vst.msk [vmem:[#allocation2 + $0x20] sm:$0xff] %vm416_vm2, %v413_v2  ;;  %1749 = vmatmul.msk.f32.gmra.mxu1 %vm416_vm2, %v436_v3 }
  0xb8   : > { %v540_v5 = vld [vmem:[#allocation2 + $0x12] sm:$0xff]  ;;  %1755 = vmatmul.msk.f32.gmra.mxu2 %vm416_vm2, %v2142_v4 }
  0xb9   : > { %v787_v6 = vld [vmem:[#allocation2 + $0x16] sm:$0xff]  ;;  %1763 = vmatmul.msk.f32.gmra.mxu3 %vm416_vm2, %v540_v5 }
  0xba   : > { %1798 = vmatmul.msk.f32.gmra.mxu0 %vm416_vm2, %v787_v6  ;;  %v403_v8 = vpop.f32.mrf.mxu0  ;;  %v602_v25 = vld [vmem:[#allocation2 + $0x17] sm:$0xff] }
  0xbb   : > { %v404_v9 = vadd.f32 %v2078_v30, %v403_v8  ;;  %v996_v6 = vld [vmem:[%s2535_s5 + $0x10] sm:$0xff] }
  0xbd   : > { %v414_v10 = vmax.f32 %v404_v9, 0.0  ;;  %v995_v9 = vld [vmem:[%s2535_s5 + $0x8] sm:$0xff] }
  0xbe   : > { %v437_v11 = vld [vmem:[#allocation2 + $0x19] sm:$0xff]  ;;  %v438_v17 = vld [vmem:[#allocation2 + $0x21] sm:$0x1]  ;;  %v542_v19 = vld [vmem:[#allocation2 + $0x22] sm:$0x1] }
  0xbf   : > { %v429_v12 = vld [vmem:[#allocation2 + $0x20] sm:$0x1]  ;;  %422 = vst.msk [vmem:[#allocation2 + $0x28] sm:$0xff] %vm416_vm2, %v414_v10  ;;  %1750 = vmatmul.msk.f32.gmra.mxu1 %vm416_vm2, %v437_v11  ;;  %v604_v34 = vld [vmem:[#allocation2 + $0x27] sm:$0x1]  ;;  %v1847_v10 = vld [vmem:[%s2535_s5 + $0x98] sm:$0xff] }
  0xc0   : > { %v541_v13 = vld [vmem:[#allocation2 + $0x1a] sm:$0xff]  ;;  %1756 = vmatmul.msk.f32.gmra.mxu2 %vm416_vm2, %v429_v12 }
  0xc1   : > { %v788_v14 = vld [vmem:[#allocation2 + $0x1e] sm:$0xff]  ;;  %1764 = vmatmul.msk.f32.gmra.mxu3 %vm416_vm2, %v541_v13 }
  0xc2   : > { %1799 = vmatmul.msk.f32.gmra.mxu0 %vm416_vm2, %v788_v14  ;;  %v665_v26 = vld [vmem:[#allocation2 + $0x20] sm:$0xff]  ;;  %v406_v27 = vpop.f32.mrf.mxu0  ;;  %v1840_v14 = vld [vmem:[%s2535_s5 + $0x78] sm:$0xff] }
  0xc3   : > { %v407_v28 = vadd.f32 %v2078_v30, %v406_v27  ;;  %v603_v32 = vld [vmem:[#allocation2 + $0x1f] sm:$0xff] }
  0xc4   : > { %v994_v12 = vld [vmem:[%s2535_s5] sm:$0xff] }
  0xc5   : > { %v415_v29 = vmax.f32 %v407_v28, 0.0 }
  0xc6   : > { %v789_v18 = vld [vmem:[#allocation2 + $0x26] sm:$0xff]  ;;  %v790_v22 = vld [vmem:[#allocation2 + $0x2e] sm:$0x1]  ;;  %v852_v38 = vld [vmem:[#allocation2 + $0x2f] sm:$0x1] }
  0xc7   : > { %1751 = vmatmul.msk.f32.gmra.mxu1 %vm416_vm2, %v438_v17  ;;  %v666_v31 = vld [vmem:[#allocation2 + $0x28] sm:$0x1]  ;;  %424 = vst.msk [vmem:[#allocation2 + $0x30] sm:$0x1] %vm423_vm3, %v415_v29  ;;  %v728_v35 = vld [vmem:[#allocation2 + $0x29] sm:$0x1] }
  0xc8   : > { %1779 = vmatmul.msk.f32.vlgmr.msrb.gmra.mxu2 %vm416_vm2, %v2107_v49  ;;  %v727_v33 = vld [vmem:[#allocation2 + $0x21] sm:$0xff]  ;;  %v1839_v17 = vld [vmem:[%s2535_s5 + $0x70] sm:$0xff] }
  0xc9   : > { %1765 = vmatmul.msk.f32.gmra.mxu3 %vm416_vm2, %v542_v19  ;;  %v913_v30 = vld [vmem:[#allocation2 + $0x28] sm:$0xff]  ;;  %1197 = vmatpush.msrb.mxu2 %v1847_v10 }
  0xca   : > { %1800 = vmatmul.msk.f32.gmra.mxu0 %vm416_vm2, %v789_v18  ;;  %v851_v37 = vld [vmem:[#allocation2 + $0x27] sm:$0xff]  ;;  %v1846_v18 = vld [vmem:[%s2535_s5 + $0x90] sm:$0xff] }
  0xcb   : > { %1198 = vmatpush.msrb.mxu2 %v1846_v18 }
  0xce   : > { %v914_v36 = vld [vmem:[#allocation2 + $0x30] sm:$0x1] }
  0xcf   : > { %1770 = vmatmul.msk.f32.vlgmr.msrb.gmra.mxu1 %vm416_vm2, %v600_v23 }
  0xd0   : > { %1780 = vmatmul.msk.f32.gmra.mxu2 %vm416_vm2, %v2127_v59  ;;  %1151 = vmatpush.msrb.mxu1 %v1840_v14 }
  0xd1   : > { %1788 = vmatmul.msk.f32.vlgmr.msrb.gmra.mxu3 %vm416_vm2, %v435_v58 }
  0xd2   : > { %1801 = vmatmul.msk.f32.gmra.mxu0 %vm416_vm2, %v790_v22  ;;  %1152 = vmatpush.msrb.mxu1 %v1839_v17  ;;  %v1845_v22 = vld [vmem:[%s2535_s5 + $0x88] sm:$0xff] }
  0xd3   : > { %1199 = vmatpush.msrb.mxu2 %v1845_v22 }
  0xd4   : > { %1153 = vmatpush.msrb.mxu1 %v1838_v21 }
  0xd7   : > { %1771 = vmatmul.msk.f32.gmra.mxu1 %vm416_vm2, %v601_v24 }
  0xd8   : > { %1781 = vmatmul.msk.f32.gmra.mxu2 %vm416_vm2, %v2142_v4 }
  0xd9   : > { %1789 = vmatmul.msk.f32.gmra.mxu3 %vm416_vm2, %v436_v3  ;;  %v1821_v3 = vld [vmem:[%s2535_s5 + $0x28] sm:$0xff] }
  0xda   : > { %1029 = vmatpush.msra.mxu3 %v1821_v3  ;;  %v1874_v3 = vld [vmem:[%s2535_s5 + $0x110] sm:$0xff] }
  0xdf   : > { %1772 = vmatmul.msk.f32.gmra.mxu1 %vm416_vm2, %v602_v25 }
  0xe0   : > { %1782 = vmatmul.msk.f32.gmra.mxu2 %vm416_vm2, %v665_v26 }
  0xe1   : > { %1790 = vmatmul.msk.f32.gmra.mxu3 %vm416_vm2, %v437_v11  ;;  %v1820_v11 = vld [vmem:[%s2535_s5 + $0x20] sm:$0xff] }
  0xe2   : > { %1030 = vmatpush.msra.mxu3 %v1820_v11  ;;  %v1865_v11 = vld [vmem:[%s2535_s5 + $0xe0] sm:$0xff] }
  0xe7   : > { %1773 = vmatmul.msk.f32.gmra.mxu1 %vm416_vm2, %v603_v32 }
  0xe8   : > { %1783 = vmatmul.msk.f32.gmra.mxu2 %vm416_vm2, %v666_v31 }
  0xe9   : > { %1791 = vmatmul.msk.f32.gmra.mxu3 %vm416_vm2, %v727_v33 }
  0xef   : > { %1774 = vmatmul.msk.f32.gmra.mxu1 %vm416_vm2, %v604_v34 }
  0xf0   : > { %1815 = vmatmul.msk.f32.vlgmr.msra.gmra.mxu2 %vm416_vm2, %v2127_v59 }
  0xf1   : > { %1792 = vmatmul.msk.f32.gmra.mxu3 %vm416_vm2, %v728_v35 }
  0xf7   : > { %1806 = vmatmul.msk.f32.vlgmr.msra.gmra.mxu1 %vm416_vm2, %v601_v24 }
  0xf8   : > { %1816 = vmatmul.msk.f32.gmra.mxu2 %vm416_vm2, %v2142_v4  ;;  %v997_v4 = vld [vmem:[%s2535_s5 + $0x18] sm:$0xff] }
  0xf9   : > { %1062 = vmatpush.msra.mxu0 %v997_v4 }
  0xfb   : > { %1063 = vmatpush.msra.mxu0 %v996_v6  ;;  %v1866_v6 = vld [vmem:[%s2535_s5 + $0xe8] sm:$0xff] }
  0xfd   : > { %1064 = vmatpush.msra.mxu0 %v995_v9  ;;  %v1873_v9 = vld [vmem:[%s2535_s5 + $0x108] sm:$0xff] }
  0xff   : > { %1807 = vmatmul.msk.f32.gmra.mxu1 %vm416_vm2, %v602_v25  ;;  %1065 = vmatpush.msra.mxu0 %v994_v12  ;;  %v1837_v25 = vld [vmem:[%s2535_s5 + $0x60] sm:$0xff] }
 0x100   : > { %1817 = vmatmul.msk.f32.gmra.mxu2 %vm416_vm2, %v665_v26  ;;  %v1844_v26 = vld [vmem:[%s2535_s5 + $0x80] sm:$0xff]  ;;  %1154 = vmatpush.msrb.mxu1 %v1837_v25 }
 0x101   : > { %1200 = vmatpush.msrb.mxu2 %v1844_v26 }
 0x107   : > { %1808 = vmatmul.msk.f32.gmra.mxu1 %vm416_vm2, %v603_v32 }
 0x108   : > { %1818 = vmatmul.msk.f32.gmra.mxu2 %vm416_vm2, %v913_v30  ;;  %v2280_v30 = vld [vmem:[%s2534_s4] ss:$0 sm:$0xff] }
 0x10f   : > { %1809 = vmatmul.msk.f32.gmra.mxu1 %vm416_vm2, %v851_v37  ;;  %v1832_v37 = vld [vmem:[%s2535_s5 + $0x50] sm:$0xff] }
 0x110   : > { %1819 = vmatmul.msk.f32.gmra.mxu2 %vm416_vm2, %v914_v36  ;;  %v1833_v36 = vld [vmem:[%s2535_s5 + $0x58] sm:$0xff] }
 0x111   : > { %1105 = vmatpush.msrb.mxu3 %v1833_v36 }
 0x113   : > { %1106 = vmatpush.msrb.mxu3 %v1832_v37 }
 0x117   : > { %1810 = vmatmul.msk.f32.gmra.mxu1 %vm416_vm2, %v852_v38 }
 0x122   : > { %v523_v39 = vpop.f32.mrf.mxu2 }
 0x124   : > { %v476_v40 = vpop.f32.mrf.mxu1 }
 0x125   : > { %v524_v41 = vadd.f32 %v523_v39, %v476_v40 }
 0x12b   : > { %v526_v42 = vpop.f32.mrf.mxu2 }
 0x12c   : > { %v479_v43 = vpop.f32.mrf.mxu1  ;;  %v580_v45 = vpop.f32.mrf.mxu3 }
 0x12d   : > { %v527_v44 = vadd.f32 %v526_v42, %v479_v43  ;;  %v595_v13 = vadd.f32 %v580_v45, %v524_v41  ;;  %v1854_v43 = vld [vmem:[%s2535_s5 + $0xb8] sm:$0xff] }
 0x12e   : > { %1243 = vmatpush.msrb.mxu0 %v1854_v43 }
 0x12f   : > { %v828_v19 = vpop.f32.mrf.mxu0 }
 0x133   : > { %v529_v46 = vpop.f32.mrf.mxu2 }
 0x134   : > { %v482_v47 = vpop.f32.mrf.mxu1  ;;  %v583_v50 = vpop.f32.mrf.mxu3 }
 0x135   : > { %v2207_v48 = vadd.f32 %v529_v46, %v482_v47  ;;  %v596_v27 = vadd.f32 %v583_v50, %v527_v44  ;;  %v1853_v47 = vld [vmem:[%s2535_s5 + $0xb0] sm:$0xff] }
 0x136   : > { %1244 = vmatpush.msrb.mxu0 %v1853_v47 }
 0x137   : > { %v831_v38 = vpop.f32.mrf.mxu0 }
 0x13b   : > { %v532_v49 = vpop.f32.mrf.mxu2 }
 0x13c   : > { %v485_v51 = vpop.f32.mrf.mxu1  ;;  %v2211_v55 = vpop.f32.mrf.mxu3 }
 0x13d   : > { %v2209_v52 = vadd.f32 %v532_v49, %v485_v51  ;;  %v597_v39 = vadd.f32 %v2211_v55, %v2207_v48  ;;  %v1852_v51 = vld [vmem:[%s2535_s5 + $0xa8] sm:$0xff] }
 0x13e   : > { %v1831_v55 = vld [vmem:[%s2535_s5 + $0x48] sm:$0xff]  ;;  %1245 = vmatpush.msrb.mxu0 %v1852_v51 }
 0x13f   : > { %1107 = vmatpush.msrb.mxu3 %v1831_v55  ;;  %v834_v4 = vpop.f32.mrf.mxu0 }
 0x140   : > { %1246 = vmatpush.msrb.mxu0 %v1851_v57 }
 0x141   : > { %1108 = vmatpush.msrb.mxu3 %v1830_v60 }
 0x143   : > { %v535_v53 = vpop.f32.mrf.mxu2 }
 0x144   : > { %v488_v54 = vpop.f32.mrf.mxu1  ;;  %v2221_v61 = vpop.f32.mrf.mxu3 }
 0x145   : > { %v2213_v56 = vadd.f32 %v535_v53, %v488_v54 }
 0x147   : > { %v837_v25 = vpop.f32.mrf.mxu0 }
 0x14b   : > { %v704_v58 = vpop.f32.mrf.mxu2 }
 0x14c   : > { %v642_v59 = vpop.f32.mrf.mxu1  ;;  %v2223_v0 = vpop.f32.mrf.mxu3 }
 0x14d   : > { %v657_v15 = vadd.f32 %v642_v59, %v595_v13  ;;  %v1875_v59 = vld [vmem:[%s2535_s5 + $0x118] sm:$0xff] }
 0x14e   : > { %1381 = vmatpush.msra.mxu2 %v1875_v59 }
 0x14f   : > { %v719_v23 = vadd.f32 %v704_v58, %v657_v15  ;;  %v1868_v58 = vld [vmem:[%s2535_s5 + $0xf8] sm:$0xff] }
 0x150   : > { %1335 = vmatpush.msra.mxu1 %v1868_v58  ;;  %1382 = vmatpush.msra.mxu2 %v1874_v3 }
 0x152   : > { %1383 = vmatpush.msra.mxu2 %v1873_v9  ;;  %v1415_v9 = vld [vmem:[%s2537_s7 + $0x18] sm:$0xff] }
 0x153   : > { %v707_v62 = vpop.f32.mrf.mxu2 }
 0x154   : > { %v645_v63 = vpop.f32.mrf.mxu1  ;;  %v766_v7 = vpop.f32.mrf.mxu3 }
 0x155   : > { %v781_v28 = vadd.f32 %v766_v7, %v719_v23  ;;  %v658_v29 = vadd.f32 %v645_v63, %v596_v27 }
 0x157   : > { %v843_v32 = vadd.f32 %v828_v19, %v781_v28  ;;  %v720_v34 = vadd.f32 %v707_v62, %v658_v29  ;;  %v598_v62 = vadd.f32 %v2221_v61, %v2209_v52  ;;  %v599_v19 = vadd.f32 %v2223_v0, %v2213_v56  ;;  %v1861_v28 = vld [vmem:[%s2535_s5 + $0xd8] sm:$0xff] }
 0x15b   : > { %v2225_v1 = vpop.f32.mrf.mxu2 }
 0x15c   : > { %v648_v2 = vpop.f32.mrf.mxu1  ;;  %v769_v24 = vpop.f32.mrf.mxu3 }
 0x15d   : > { %v782_v40 = vadd.f32 %v769_v24, %v720_v34  ;;  %v659_v44 = vadd.f32 %v648_v2, %v597_v39  ;;  %v1867_v2 = vld [vmem:[%s2535_s5 + $0xf0] sm:$0xff] }
 0x15e   : > { %1336 = vmatpush.msra.mxu1 %v1867_v2 }
 0x15f   : > { %v844_v50 = vadd.f32 %v831_v38, %v782_v40  ;;  %v721_v53 = vadd.f32 %v2225_v1, %v659_v44  ;;  %v840_v38 = vpop.f32.mrf.mxu0 }
 0x160   : > { %1337 = vmatpush.msra.mxu1 %v1866_v6 }
 0x162   : > { %1338 = vmatpush.msra.mxu1 %v1865_v11 }
 0x163   : > { %v2233_v5 = vpop.f32.mrf.mxu2 }
 0x164   : > { %v2238_v8 = vpop.f32.mrf.mxu1  ;;  %v772_v41 = vpop.f32.mrf.mxu3 }
 0x165   : > { %v783_v63 = vadd.f32 %v772_v41, %v721_v53  ;;  %v660_v52 = vadd.f32 %v2238_v8, %v598_v62  ;;  %v1872_v8 = vld [vmem:[%s2535_s5 + $0x100] sm:$0xff] }
 0x166   : > { %1384 = vmatpush.msra.mxu2 %v1872_v8 }
 0x167   : > { %v845_v13 = vadd.f32 %v834_v4, %v783_v63  ;;  %v722_v17 = vadd.f32 %v2233_v5, %v660_v52 }
 0x16b   : > { %v2255_v16 = vpop.f32.mrf.mxu2 }
 0x16c   : > { %v2263_v20 = vpop.f32.mrf.mxu1  ;;  %v775_v61 = vpop.f32.mrf.mxu3 }
 0x16d   : > { %v784_v21 = vadd.f32 %v775_v61, %v722_v17  ;;  %v661_v23 = vadd.f32 %v2263_v20, %v599_v19  ;;  %v1860_v20 = vld [vmem:[%s2535_s5 + $0xd0] sm:$0xff]  ;;  %v1880_v19 = vld [vmem:[%s2537_s7 + $0x28] sm:$0xff] }
 0x16e   : > { %v1881_v17 = vld [vmem:[%s2537_s7 + $0x30] sm:$0xff] }
 0x16f   : > { %v846_v5 = vadd.f32 %v837_v25, %v784_v21  ;;  %v723_v56 = vadd.f32 %v2255_v16, %v661_v23  ;;  %v1859_v16 = vld [vmem:[%s2535_s5 + $0xc8] sm:$0xff] }
 0x173   : > { %v952_v31 = vpop.f32.mrf.mxu2 }
 0x174   : > { %v890_v33 = vpop.f32.mrf.mxu1  ;;  %v778_v26 = vpop.f32.mrf.mxu3 }
 0x175   : > { %v905_v35 = vadd.f32 %v890_v33, %v843_v32 }
 0x177   : > { %v967_v42 = vadd.f32 %v952_v31, %v905_v35  ;;  %v785_v35 = vadd.f32 %v778_v26, %v723_v56  ;;  %v1893_v56 = vld [vmem:[%s2537_s7 + $0x78] sm:$0xff] }
 0x179   : > { %v976_v45 = vadd.f32 %v2280_v30, %v967_v42  ;;  %v847_v40 = vadd.f32 %v840_v38, %v785_v35  ;;  %v1902_v35 = vld [vmem:[%s2537_s7 + $0xb0] sm:$0xff] }
 0x17b   : > { %v955_v46 = vpop.f32.mrf.mxu2  ;;  %v981_v49 = vmax.f32 %v976_v45, 0.0 }
 0x17c   : > { %v893_v48 = vpop.f32.mrf.mxu1 }
 0x17d   : > { %986 = vst.msk [vmem:[#allocation2] sm:$0xff] %vm416_vm2, %v981_v49  ;;  %v906_v54 = vadd.f32 %v893_v48, %v844_v50  ;;  %v1858_v49 = vld [vmem:[%s2535_s5 + $0xc0] sm:$0xff] }
 0x17f   : > { %v968_v1 = vadd.f32 %v955_v46, %v906_v54 }
 0x181   : > { %v977_v7 = vadd.f32 %v2280_v30, %v968_v1 }
 0x183   : > { %v958_v10 = vpop.f32.mrf.mxu2  ;;  %v982_v12 = vmax.f32 %v977_v7, 0.0  ;;  %v1882_v7 = vld [vmem:[%s2537_s7 + $0x38] sm:$0xff] }
 0x184   : > { %v896_v14 = vpop.f32.mrf.mxu1  ;;  %v991_v15 = vld [vmem:[#allocation2] sm:$0xff] }
 0x185   : > { %987 = vst.msk [vmem:[#allocation2 + $0x8] sm:$0xff] %vm416_vm2, %v982_v12  ;;  %v907_v18 = vadd.f32 %v896_v14, %v845_v13  ;;  %1827 = vmatmul.msk.f32.vlgmr.msra.gmra.mxu0 %vm416_vm2, %v991_v15 }
 0x186   : > { %1437 = vmatpush.msra.mxu0 %v1882_v7 }
 0x187   : > { %v969_v22 = vadd.f32 %v958_v10, %v907_v18  ;;  %v1414_v18 = vld [vmem:[%s2537_s7 + $0x10] sm:$0xff] }
 0x188   : > { %1438 = vmatpush.msra.mxu0 %v1881_v17 }
 0x189   : > { %v978_v24 = vadd.f32 %v2280_v30, %v969_v22  ;;  %v1413_v22 = vld [vmem:[%s2537_s7 + $0x8] sm:$0xff] }
 0x18a   : > { %1439 = vmatpush.msra.mxu0 %v1880_v19  ;;  %v1913_v19 = vld [vmem:[%s2537_s7 + $0xf8] sm:$0xff] }
 0x18b   : > { %v983_v27 = vmax.f32 %v978_v24, 0.0  ;;  %v961_v29 = vpop.f32.mrf.mxu2 }
 0x18c   : > { %v899_v31 = vpop.f32.mrf.mxu1  ;;  %v998_v32 = vld [vmem:[#allocation2 + $0x1] sm:$0xff] }
 0x18d   : > { %v992_v33 = vld [vmem:[#allocation2 + $0x8] sm:$0xff]  ;;  %988 = vst.msk [vmem:[#allocation2 + $0x10] sm:$0xff] %vm416_vm2, %v983_v27  ;;  %v908_v0 = vadd.f32 %v899_v31, %v846_v5  ;;  %1824 = vmatmul.msk.f32.vlgmr.msra.gmra.mxu3 %vm416_vm2, %v998_v32  ;;  %v1908_v27 = vld [vmem:[%s2537_s7 + $0xd8] sm:$0xff]  ;;  %v1879_v5 = vld [vmem:[%s2537_s7 + $0x20] sm:$0xff] }
 0x18e   : > { %v1122_v34 = vld [vmem:[#allocation2 + $0x7] sm:$0xff]  ;;  %1828 = vmatmul.msk.f32.gmra.mxu0 %vm416_vm2, %v992_v33  ;;  %1848 = vmatmul.msk.f32.vlgmr.msrb.gmra.mxu2 %vm416_vm2, %v992_v33  ;;  %v1903_v31 = vld [vmem:[%s2537_s7 + $0xb8] sm:$0xff]  ;;  %v1907_v32 = vld [vmem:[%s2537_s7 + $0xd0] sm:$0xff] }
 0x18f   : > { %1841 = vmatmul.msk.f32.vlgmr.msrb.gmra.mxu1 %vm416_vm2, %v1122_v34  ;;  %v970_v36 = vadd.f32 %v961_v29, %v908_v0  ;;  %1289 = vmatpush.msra.mxu3 %v1861_v28  ;;  %v1076_v57 = vld [vmem:[#allocation2 + $0x2] sm:$0xff]  ;;  %v1888_v34 = vld [vmem:[%s2537_s7 + $0x58] sm:$0xff] }
 0x190   : > { %v1412_v28 = vld [vmem:[%s2537_s7] sm:$0xff]  ;;  %1609 = vmatpush.msrb.mxu2 %v1908_v27  ;;  %1440 = vmatpush.msra.mxu0 %v1879_v5 }
 0x191   : > { %v979_v37 = vadd.f32 %v2280_v30, %v970_v36  ;;  %1290 = vmatpush.msra.mxu3 %v1860_v20  ;;  %1579 = vmatpush.msrb.mxu1 %v1903_v31  ;;  %v1887_v36 = vld [vmem:[%s2537_s7 + $0x50] sm:$0xff] }
 0x192   : > { %1610 = vmatpush.msrb.mxu2 %v1907_v32  ;;  %v1895_v32 = vld [vmem:[%s2537_s7 + $0x80] sm:$0xff] }
 0x193   : > { %v984_v39 = vmax.f32 %v979_v37, 0.0  ;;  %1291 = vmatpush.msra.mxu3 %v1859_v16  ;;  %v964_v45 = vpop.f32.mrf.mxu2  ;;  %v1892_v16 = vld [vmem:[%s2537_s7 + $0x70] sm:$0xff]  ;;  %1580 = vmatpush.msrb.mxu1 %v1902_v35 }
 0x194   : > { %v902_v41 = vpop.f32.mrf.mxu1  ;;  %v999_v42 = vld [vmem:[#allocation2 + $0x9] sm:$0xff]  ;;  %v1000_v53 = vld [vmem:[#allocation2 + $0x11] sm:$0x1]  ;;  %v1124_v55 = vld [vmem:[#allocation2 + $0x17] sm:$0x1] }
 0x195   : > { %v993_v43 = vld [vmem:[#allocation2 + $0x10] sm:$0x1]  ;;  %989 = vst.msk [vmem:[#allocation2 + $0x18] sm:$0xff] %vm416_vm2, %v984_v39  ;;  %v909_v46 = vadd.f32 %v902_v41, %v847_v40  ;;  %1825 = vmatmul.msk.f32.gmra.mxu3 %vm416_vm2, %v999_v42  ;;  %v1078_v63 = vld [vmem:[#allocation2 + $0x12] sm:$0x1]  ;;  %v1906_v39 = vld [vmem:[%s2537_s7 + $0xc8] sm:$0xff] }
 0x196   : > { %v1123_v44 = vld [vmem:[#allocation2 + $0xf] sm:$0xff]  ;;  %1829 = vmatmul.msk.f32.gmra.mxu0 %vm416_vm2, %v993_v43  ;;  %1292 = vmatpush.msra.mxu3 %v1858_v49  ;;  %v1905_v49 = vld [vmem:[%s2537_s7 + $0xc0] sm:$0xff] }
 0x197   : > { %v1169_v47 = vld [vmem:[#allocation2 + $0x10] sm:$0xff]  ;;  %1842 = vmatmul.msk.f32.gmra.mxu1 %vm416_vm2, %v1123_v44  ;;  %v971_v50 = vadd.f32 %v964_v45, %v909_v46  ;;  %v1886_v40 = vld [vmem:[%s2537_s7 + $0x48] sm:$0xff]  ;;  %1611 = vmatpush.msrb.mxu2 %v1906_v39  ;;  %v1885_v45 = vld [vmem:[%s2537_s7 + $0x40] sm:$0xff] }
 0x198   : > { %1849 = vmatmul.msk.f32.gmra.mxu2 %vm416_vm2, %v1169_v47  ;;  %v1260_v3 = vld [vmem:[#allocation2 + $0xe] sm:$0xff]  ;;  %v1890_v46 = vld [vmem:[%s2537_s7 + $0x60] sm:$0xff] }
 0x199   : > { %v980_v48 = vadd.f32 %v2280_v30, %v971_v50  ;;  %v1077_v30 = vld [vmem:[#allocation2 + $0xa] sm:$0xff]  ;;  %1612 = vmatpush.msrb.mxu2 %v1905_v49 }
 0x19a   : > { %v1891_v41 = vld [vmem:[%s2537_s7 + $0x68] sm:$0xff] }
 0x19b   : > { %v985_v51 = vmax.f32 %v980_v48, 0.0 }
 0x19c   : > { %v1170_v54 = vld [vmem:[#allocation2 + $0x18] sm:$0x1]  ;;  %v1216_v59 = vld [vmem:[#allocation2 + $0x19] sm:$0x1]  ;;  %v1308_v1 = vld [vmem:[#allocation2 + $0x1f] sm:$0x1] }
 0x19d   : > { %990 = vst.msk [vmem:[#allocation2 + $0x20] sm:$0x1] %vm423_vm3, %v985_v51  ;;  %1826 = vmatmul.msk.f32.gmra.mxu3 %vm416_vm2, %v1000_v53  ;;  %v1215_v58 = vld [vmem:[#allocation2 + $0x11] sm:$0xff]  ;;  %v1262_v6 = vld [vmem:[#allocation2 + $0x1e] sm:$0x1] }
 0x19e   : > { %1855 = vmatmul.msk.f32.vlgmr.msrb.gmra.mxu0 %vm416_vm2, %v999_v42  ;;  %v1307_v60 = vld [vmem:[#allocation2 + $0x17] sm:$0xff] }
 0x19f   : > { %1843 = vmatmul.msk.f32.gmra.mxu1 %vm416_vm2, %v1124_v55  ;;  %v1353_v62 = vld [vmem:[#allocation2 + $0x18] sm:$0xff]  ;;  %1489 = vmatpush.msrb.mxu0 %v1888_v34 }
 0x1a0   : > { %1850 = vmatmul.msk.f32.gmra.mxu2 %vm416_vm2, %v1170_v54  ;;  %v1261_v4 = vld [vmem:[#allocation2 + $0x16] sm:$0xff] }
 0x1a1   : > { %1490 = vmatpush.msrb.mxu0 %v1887_v36 }
 0x1a3   : > { %1491 = vmatpush.msrb.mxu0 %v1886_v40 }
 0x1a4   : > { %v1354_v2 = vld [vmem:[#allocation2 + $0x20] sm:$0x1] }
 0x1a5   : > { %1834 = vmatmul.msk.f32.vlgmr.msrb.gmra.mxu3 %vm416_vm2, %v1076_v57  ;;  %1492 = vmatpush.msrb.mxu0 %v1885_v45 }
 0x1a6   : > { %1856 = vmatmul.msk.f32.gmra.mxu0 %vm416_vm2, %v1215_v58  ;;  %1460 = vmatpush.msrb.mxu3 %v1415_v9 }
 0x1a7   : > { %1869 = vmatmul.msk.f32.vlgmr.msra.gmra.mxu1 %vm416_vm2, %v1123_v44  ;;  %v1901_v44 = vld [vmem:[%s2537_s7 + $0xa8] sm:$0xff] }
 0x1a8   : > { %1876 = vmatmul.msk.f32.vlgmr.msra.gmra.mxu2 %vm416_vm2, %v1169_v47  ;;  %1461 = vmatpush.msrb.mxu3 %v1414_v18  ;;  %v1900_v47 = vld [vmem:[%s2537_s7 + $0xa0] sm:$0xff]  ;;  %v1898_v18 = vld [vmem:[%s2537_s7 + $0x98] sm:$0xff] }
 0x1a9   : > { %1581 = vmatpush.msrb.mxu1 %v1901_v44 }
 0x1aa   : > { %1462 = vmatpush.msrb.mxu3 %v1413_v22 }
 0x1ab   : > { %1582 = vmatpush.msrb.mxu1 %v1900_v47 }
 0x1ac   : > { %1463 = vmatpush.msrb.mxu3 %v1412_v28  ;;  %v1896_v28 = vld [vmem:[%s2537_s7 + $0x88] sm:$0xff] }
 0x1ad   : > { %1835 = vmatmul.msk.f32.gmra.mxu3 %vm416_vm2, %v1077_v30 }
 0x1ae   : > { %1857 = vmatmul.msk.f32.gmra.mxu0 %vm416_vm2, %v1216_v59  ;;  %v1933_v59 = vld [vmem:[%s2536_s6] ss:$0 sm:$0xff] }
 0x1af   : > { %1870 = vmatmul.msk.f32.gmra.mxu1 %vm416_vm2, %v1307_v60 }
 0x1b0   : > { %1877 = vmatmul.msk.f32.gmra.mxu2 %vm416_vm2, %v1353_v62 }
 0x1b5   : > { %1836 = vmatmul.msk.f32.gmra.mxu3 %vm416_vm2, %v1078_v63 }
 0x1b7   : > { %1871 = vmatmul.msk.f32.gmra.mxu1 %vm416_vm2, %v1308_v1 }
 0x1b8   : > { %1878 = vmatmul.msk.f32.gmra.mxu2 %vm416_vm2, %v1354_v2 }
 0x1bd   : > { %1862 = vmatmul.msk.f32.vlgmr.msra.gmra.mxu3 %vm416_vm2, %v1260_v3 }
 0x1be   : > { %1519 = vmatpush.msra.mxu3 %v1893_v56 }
 0x1c0   : > { %1520 = vmatpush.msra.mxu3 %v1892_v16  ;;  %v1917_v16 = vld [vmem:[%s2537_s7 + $0x110] sm:$0xff] }
 0x1c2   : > { %1521 = vmatpush.msra.mxu3 %v1891_v41 }
 0x1c4   : > { %1522 = vmatpush.msra.mxu3 %v1890_v46 }
 0x1c5   : > { %1863 = vmatmul.msk.f32.gmra.mxu3 %vm416_vm2, %v1261_v4 }
 0x1cd   : > { %1864 = vmatmul.msk.f32.gmra.mxu3 %vm416_vm2, %v1262_v6 }
 0x202   : > { %v1067_v10 = vpop.f32.mrf.mxu0 }
 0x20b   : > { %v1070_v8 = vpop.f32.mrf.mxu0 }
 0x20c   : > { %v1156_v11 = vpop.f32.mrf.mxu1 }
 0x210   : > { %v1032_v52 = vpop.f32.mrf.mxu3 }
 0x211   : > { %v1202_v13 = vpop.f32.mrf.mxu2  ;;  %v1068_v25 = vadd.f32 %v1067_v10, %v1032_v52 }
 0x213   : > { %v1073_v23 = vpop.f32.mrf.mxu0 }
 0x214   : > { %v1159_v15 = vpop.f32.mrf.mxu1 }
 0x218   : > { %v1035_v61 = vpop.f32.mrf.mxu3 }
 0x219   : > { %v1071_v37 = vadd.f32 %v1070_v8, %v1035_v61 }
 0x21b   : > { %v2407_v21 = vpop.f32.mrf.mxu2  ;;  %v1248_v38 = vpop.f32.mrf.mxu0 }
 0x21c   : > { %v1162_v29 = vpop.f32.mrf.mxu1 }
 0x220   : > { %v2396_v12 = vpop.f32.mrf.mxu3 }
 0x221   : > { %v1074_v55 = vadd.f32 %v1073_v23, %v2396_v12 }
 0x223   : > { %v1208_v33 = vpop.f32.mrf.mxu2  ;;  %v1251_v62 = vpop.f32.mrf.mxu0 }
 0x224   : > { %v1340_v50 = vpop.f32.mrf.mxu1 }
 0x228   : > { %v1110_v14 = vpop.f32.mrf.mxu3 }
 0x229   : > { %v1119_v26 = vadd.f32 %v1110_v14, %v1068_v25  ;;  %v1897_v25 = vld [vmem:[%s2537_s7 + $0x90] sm:$0xff] }
 0x22b   : > { %v1165_v0 = vadd.f32 %v1156_v11, %v1119_v26  ;;  %v1386_v53 = vpop.f32.mrf.mxu2  ;;  %v1254_v12 = vpop.f32.mrf.mxu0  ;;  %v1912_v26 = vld [vmem:[%s2537_s7 + $0xf0] sm:$0xff] }
 0x22c   : > { %v1343_v4 = vpop.f32.mrf.mxu1 }
 0x22d   : > { %v1211_v43 = vadd.f32 %v1202_v13, %v1165_v0  ;;  %v1918_v0 = vld [vmem:[%s2537_s7 + $0x118] sm:$0xff] }
 0x22f   : > { %v1257_v51 = vadd.f32 %v1248_v38, %v1211_v43  ;;  %v1915_v38 = vld [vmem:[%s2537_s7 + $0x100] sm:$0xff] }
 0x230   : > { %v1113_v24 = vpop.f32.mrf.mxu3 }
 0x231   : > { %v1120_v42 = vadd.f32 %v1113_v24, %v1071_v37  ;;  %v1916_v37 = vld [vmem:[%s2537_s7 + $0x108] sm:$0xff] }
 0x233   : > { %v1166_v48 = vadd.f32 %v1159_v15, %v1120_v42  ;;  %v1389_v7 = vpop.f32.mrf.mxu2 }
 0x235   : > { %v1212_v60 = vadd.f32 %v2407_v21, %v1166_v48  ;;  %v1346_v21 = vpop.f32.mrf.mxu1 }
 0x237   : > { %v1258_v3 = vadd.f32 %v1251_v62, %v1212_v60 }
 0x238   : > { %v1116_v20 = vpop.f32.mrf.mxu3 }
 0x239   : > { %v1121_v58 = vadd.f32 %v1116_v20, %v1074_v55 }
 0x23b   : > { %v1167_v1 = vadd.f32 %v1162_v29, %v1121_v58  ;;  %v1392_v27 = vpop.f32.mrf.mxu2  ;;  %v1911_v29 = vld [vmem:[%s2537_s7 + $0xe8] sm:$0xff] }
 0x23d   : > { %v1213_v10 = vadd.f32 %v1208_v33, %v1167_v1  ;;  %v1910_v33 = vld [vmem:[%s2537_s7 + $0xe0] sm:$0xff] }
 0x23f   : > { %v1259_v8 = vadd.f32 %v1254_v12, %v1213_v10 }
 0x240   : > { %v1294_v54 = vpop.f32.mrf.mxu3 }
 0x241   : > { %v1303_v57 = vadd.f32 %v1294_v54, %v1257_v51 }
 0x243   : > { %v1349_v30 = vadd.f32 %v1340_v50, %v1303_v57 }
 0x245   : > { %v1395_v63 = vadd.f32 %v1386_v53, %v1349_v30 }
 0x247   : > { %v1402_v2 = vadd.f32 %v1933_v59, %v1395_v63 }
 0x248   : > { %v1297_v6 = vpop.f32.mrf.mxu3 }
 0x249   : > { %v1405_v52 = vmax.f32 %v1402_v2, 0.0  ;;  %v1304_v61 = vadd.f32 %v1297_v6, %v1258_v3 }
 0x24b   : > { %1408 = vst.msk [vmem:[#allocation2] sm:$0xff] %vm416_vm2, %v1405_v52  ;;  %v1350_v9 = vadd.f32 %v1343_v4, %v1304_v61 }
 0x24d   : > { %v1396_v11 = vadd.f32 %v1389_v7, %v1350_v9 }
 0x24f   : > { %v1403_v13 = vadd.f32 %v1933_v59, %v1396_v11 }
 0x250   : > { %v1300_v14 = vpop.f32.mrf.mxu3 }
 0x251   : > { %v1406_v15 = vmax.f32 %v1403_v13, 0.0  ;;  %v1305_v17 = vadd.f32 %v1300_v14, %v1259_v8 }
 0x252   : > { %v1416_v22 = vld [vmem:[#allocation2 + $0x1] sm:$0x1]  ;;  %v1411_v23 = vld [vmem:[#allocation2] sm:$0x1]  ;;  %v1468_v56 = vld [vmem:[#allocation2 + $0x2] sm:$0x1] }
 0x253   : > { %1409 = vst.msk [vmem:[#allocation2 + $0x8] sm:$0xff] %vm416_vm2, %v1406_v15  ;;  %v1351_v24 = vadd.f32 %v1346_v21, %v1305_v17  ;;  %1883 = vmatmul.msk.f32.vlgmr.msra.gmra.mxu0 %vm416_vm2, %v1416_v22  ;;  %1884 = vmatmul.msk.f32.vlgmr.msrb.gmra.mxu3 %vm416_vm2, %v1411_v23  ;;  %v1498_v20 = vld [vmem:[#allocation2 + $0x7] sm:$0x1] }
 0x254   : > { %1549 = vmatpush.msra.mxu0 %v1898_v18  ;;  %1639 = vmatpush.msrb.mxu3 %v1913_v19 }
 0x255   : > { %v1397_v5 = vadd.f32 %v1392_v27, %v1351_v24 }
 0x256   : > { %1550 = vmatpush.msra.mxu0 %v1897_v25  ;;  %1640 = vmatpush.msrb.mxu3 %v1912_v26 }
 0x257   : > { %v1404_v31 = vadd.f32 %v1933_v59, %v1397_v5  ;;  %v1678_v59 = vld [vmem:[%s2538_s8] sm:$0x1] }
 0x258   : > { %1551 = vmatpush.msra.mxu0 %v1896_v28  ;;  %1641 = vmatpush.msrb.mxu3 %v1911_v29 }
 0x259   : > { %v1407_v34 = vmax.f32 %v1404_v31, 0.0 }
 0x25a   : > { %v1558_v35 = vld [vmem:[#allocation2 + $0x9] sm:$0x1]  ;;  %v1588_v36 = vld [vmem:[#allocation2 + $0xe] sm:$0x1]  ;;  %1552 = vmatpush.msra.mxu0 %v1895_v32  ;;  %1642 = vmatpush.msrb.mxu3 %v1910_v33  ;;  %v1528_v39 = vld [vmem:[#allocation2 + $0x8] sm:$0x1] }
 0x25b   : > { %1410 = vst.msk [vmem:[#allocation2 + $0x10] sm:$0x1] %vm423_vm3, %v1407_v34  ;;  %1889 = vmatmul.msk.f32.vlgmr.msrb.gmra.mxu0 %vm416_vm2, %v1468_v56  ;;  %1894 = vmatmul.msk.f32.vlgmr.msra.gmra.mxu3 %vm416_vm2, %v1498_v20  ;;  %v1618_v40 = vld [vmem:[#allocation2 + $0xf] sm:$0x1] }
 0x25c   : > { %1904 = vmatmul.msk.f32.vlgmr.msrb.gmra.mxu1 %vm416_vm2, %v1558_v35  ;;  %1909 = vmatmul.msk.f32.vlgmr.msrb.gmra.mxu2 %vm416_vm2, %v1588_v36 }
 0x25d   : > { %1669 = vmatpush.msrb.mxu0 %v1918_v0 }
 0x25f   : > { %1670 = vmatpush.msrb.mxu0 %v1917_v16 }
 0x261   : > { %1671 = vmatpush.msrb.mxu0 %v1916_v37 }
 0x262   : > { %v1648_v41 = vld [vmem:[#allocation2 + $0x10] sm:$0x1] }
 0x263   : > { %1899 = vmatmul.msk.f32.vlgmr.msra.gmra.mxu0 %vm416_vm2, %v1528_v39  ;;  %1914 = vmatmul.msk.f32.vlgmr.msrb.gmra.mxu3 %vm416_vm2, %v1618_v40 }
 0x264   : > { %1672 = vmatpush.msrb.mxu0 %v1915_v38 }
 0x26b   : > { %1919 = vmatmul.msk.f32.vlgmr.msrb.gmra.mxu0 %vm416_vm2, %v1648_v41 }
 0x2d0   : > { %v1442_v42 = vpop.f32.mrf.mxu0 }
 0x2d6   : > { %v1465_v43 = vpop.f32.mrf.mxu3 }
 0x2d7   : > { %v1466_v45 = vadd.f32 %v1465_v43, %v1442_v42 }
 0x2d8   : > { %v1494_v44 = vpop.f32.mrf.mxu0 }
 0x2d9   : > { %v1497_v46 = vadd.f32 %v1494_v44, %v1466_v45  ;;  %v1584_v51 = vpop.f32.mrf.mxu1 }
 0x2de   : > { %v1524_v47 = vpop.f32.mrf.mxu3 }
 0x2df   : > { %v1527_v49 = vadd.f32 %v1524_v47, %v1497_v46  ;;  %v1614_v54 = vpop.f32.mrf.mxu2 }
 0x2e0   : > { %v1554_v50 = vpop.f32.mrf.mxu0 }
 0x2e1   : > { %v1557_v48 = vadd.f32 %v1554_v50, %v1527_v49 }
 0x2e3   : > { %v1587_v53 = vadd.f32 %v1584_v51, %v1557_v48 }
 0x2e5   : > { %v1617_v55 = vadd.f32 %v1614_v54, %v1587_v53 }
 0x2e6   : > { %v1644_v57 = vpop.f32.mrf.mxu3 }
 0x2e7   : > { %v1647_v58 = vadd.f32 %v1644_v57, %v1617_v55 }
 0x2e8   : > { %v1674_v30 = vpop.f32.mrf.mxu0 }
 0x2e9   : > { %v1677_v60 = vadd.f32 %v1674_v30, %v1647_v58 }
 0x2eb   : > { %v1679_v62 = vadd.f32 %v1678_v59, %v1677_v60 }
 0x2ed   : > { %v1680_v63 = vmax.f32 %v1679_v62, 0.0 }
 0x2ef   : > { %1681 = vst.msk [vmem:[%s328_s23] sm:$0x1] %vm423_vm3, %v1680_v63 }
 0x2f0 PF: > { %s19_s30 = sadd.s32 1, %s1940_s30  }
 0x2f1   : > { %p16_p4 = scmp.ge.s32.totalorder %s19_s30, 4  }
 0x2f3   :  { %18 = sbr.rel (!%p16_p4) target bundleno = 1 (0x1), region = 110 }

</bundles_post_ra>
